<compile_context>
chip_gen: v5e
topology: v5e:2x2
jax: 0.10.0
libtpu: 0.0.40
codegen_flags: <defaults>
</compile_context>

<pallas_src>
import functools

import jax
import jax.numpy as jnp
from jax.experimental import pallas as pl
from jax.experimental.pallas import tpu as pltpu


def _round_up(x, m):
    return (x + m - 1) // m * m


def _query_vmem_limit_bytes():
    """Generation-aware scoped-VMEM budget, with headroom below physical capacity."""
    cap = 64 << 20
    try:
        info = pltpu.get_tpu_info()
        cap = int(getattr(info, "vmem_capacity_bytes", 0)) or cap
    except Exception:  # query unavailable -> conservative default (fits v7x too)
        pass
    return min((cap * 3) // 4, 100 << 20)  # v7x: ~48 MiB, v5e/v6e: ~96 MiB


_VMEM_LIMIT_BYTES = _query_vmem_limit_bytes()


def _plan_tiles(N):
    """Choose (Np, tm, tk) for the adj @ support kernels.

    128-wide tiles reach only ~30% of the HBM roofline vs ~85%+ at 512-1024,
    so tiles grow with N.  tm divides tk in every branch, hence padding N up
    to tk makes both divide Np.
    """
    if N <= 256:
        tm, tk = 128, 128
    elif N <= 1024:
        tm, tk = 256, 512
    elif N <= 4096:
        tm, tk = 512, 1024
    else:
        tm, tk = 512, 2048
    Np = _round_up(N, tk)
    # v7x megacore: keep >= 2 row tiles where possible so both TCs get work.
    while tm > 128 and Np // tm < 2:
        tm //= 2
    return Np, tm, tk


def _pad2(a, rows, cols):
    return jnp.pad(a, ((0, rows - a.shape[0]), (0, cols - a.shape[1])))


def _pad1(a, n):
    return jnp.pad(a, (0, n - a.shape[0]))


def _resident_fits(Np, tm, tk, Din, Dout, mm, with_w2):
    """Can the (Np, Din) support slab stay fully resident in VMEM?"""
    budget = int(_VMEM_LIMIT_BYTES * 0.8)
    used = 2 * tm * tk * mm           # adj tiles (double-buffered)
    used += 2 * Np * Din * mm         # resident support (assume 2 buffers, conservative)
    used += 2 * Din * 4               # bias
    used += 2 * 2 * tm * Din * 4      # pre + act output blocks (f32, double-buffered)
    if with_w2:
        used += 2 * Din * Dout * mm   # W2 (invariant)
        used += 2 * tm * Dout * mm    # s2 output block
    return used <= budget


def _support_spec(Np, tk, Dp, resident):
    if resident:
        # Constant block index -> fetched once, stays VMEM-resident for the whole grid.
        return pl.BlockSpec((Np, Dp), lambda i, k: (0, 0))
    return pl.BlockSpec((tk, Dp), lambda i, k: (k, 0))


# ---------------------------------------------------------------------------
# Kernel 1: support1 = x @ W1   (row tiles x Fp-reduction tiles, f32 accumulate,
#                                store directly in matmul_dtype)
# ---------------------------------------------------------------------------
def _support_kernel(x_ref, w_ref, o_ref, acc_ref):
    k = pl.program_id(1)

    @pl.when(k == 0)
    def _():
        acc_ref[...] = jnp.zeros_like(acc_ref)

    acc_ref[...] += jnp.dot(x_ref[...], w_ref[...],
                            preferred_element_type=jnp.float32)

    @pl.when(k == pl.num_programs(1) - 1)
    def _():
        o_ref[...] = acc_ref[...].astype(o_ref.dtype)


def _support_matmul(xp, wp, tm, tf, out_dtype):
    Np, Fp = xp.shape
    Hp = wp.shape[1]
    out_size = jnp.dtype(out_dtype).itemsize
    return pl.pallas_call(
        _support_kernel,
        out_shape=jax.ShapeDtypeStruct((Np, Hp), out_dtype),
        grid_spec=pltpu.PrefetchScalarGridSpec(
            num_scalar_prefetch=0,
            grid=(Np // tm, Fp // tf),
            in_specs=[
                pl.BlockSpec((tm, tf), lambda i, k: (i, k)),
                pl.BlockSpec((tf, Hp), lambda i, k: (k, 0)),
            ],
            out_specs=pl.BlockSpec((tm, Hp), lambda i, k: (i, 0)),
            scratch_shapes=[pltpu.VMEM((tm, Hp), jnp.float32)],
        ),
        compiler_params=pltpu.CompilerParams(
            dimension_semantics=("parallel", "arbitrary"),
            vmem_limit_bytes=_VMEM_LIMIT_BYTES,
        ),
        cost_estimate=pl.CostEstimate(
            flops=2 * Np * Fp * Hp,
            transcendentals=0,
            bytes_accessed=Np * Fp * 4 + Fp * Hp * 4 + Np * Hp * out_size,
        ),
    )(xp, wp)


# ---------------------------------------------------------------------------
# Kernel 2 (layer 1, fused): pre1 = adj @ s1 + b1 ; h1 = relu(pre1) ; s2 = h1 @ W2
# ---------------------------------------------------------------------------
def _layer1_kernel(adj_ref, s_ref, b_ref, w2_ref, pre_ref, act_ref, s2_ref,
                   *, tk, resident_support):
    k = pl.program_id(1)

    @pl.when(k == 0)
    def _():
        pre_ref[...] = jnp.zeros_like(pre_ref)

    if resident_support:
        off = pl.multiple_of(k * tk, tk)
        s_tile = s_ref[pl.ds(off, tk), :]
    else:
        s_tile = s_ref[...]

    # Accumulate directly into the VMEM-resident f32 output block (no scratch).
    pre_ref[...] += jnp.dot(adj_ref[...], s_tile,
                            preferred_element_type=jnp.float32)

    @pl.when(k == pl.num_programs(1) - 1)
    def _():
        out = pre_ref[...] + b_ref[...]
        pre_ref[...] = out
        h = jnp.maximum(out, 0.0)
        act_ref[...] = h
        # Fused layer-2 support matmul while the h1 tile is still resident.
        s2_ref[...] = jnp.dot(h.astype(w2_ref.dtype), w2_ref[...],
                              preferred_element_type=jnp.float32
                              ).astype(s2_ref.dtype)


def _layer1_aggregate(adjp, s1, b1p, w2p, tm, tk, *, resident):
    Np = adjp.shape[0]
    Hp = s1.shape[1]
    Cp = w2p.shape[1]
    mm = adjp.dtype.itemsize
    sup_reads = Np * Hp * mm if resident else (Np // tm) * Np * Hp * mm
    kernel = functools.partial(_layer1_kernel, tk=tk, resident_support=resident)
    return pl.pallas_call(
        kernel,
        out_shape=(
            jax.ShapeDtypeStruct((Np, Hp), jnp.float32),   # pre1
            jax.ShapeDtypeStruct((Np, Hp), jnp.float32),   # h1 = relu(pre1)
            jax.ShapeDtypeStruct((Np, Cp), s1.dtype),      # s2 = h1 @ W2
        ),
        grid_spec=pltpu.PrefetchScalarGridSpec(
            num_scalar_prefetch=0,
            grid=(Np // tm, Np // tk),
            in_specs=[
                pl.BlockSpec((tm, tk), lambda i, k: (i, k)),   # adj (streamed)
                _support_spec(Np, tk, Hp, resident),           # support1
                pl.BlockSpec((1, Hp), lambda i, k: (0, 0)),    # b1 (invariant)
                pl.BlockSpec((Hp, Cp), lambda i, k: (0, 0)),   # W2 (invariant)
            ],
            out_specs=(
                pl.BlockSpec((tm, Hp), lambda i, k: (i, 0)),
                pl.BlockSpec((tm, Hp), lambda i, k: (i, 0)),
                pl.BlockSpec((tm, Cp), lambda i, k: (i, 0)),
            ),
        ),
        compiler_params=pltpu.CompilerParams(
            dimension_semantics=("parallel", "arbitrary"),
            vmem_limit_bytes=_VMEM_LIMIT_BYTES,
        ),
        cost_estimate=pl.CostEstimate(
            flops=2 * Np * Np * Hp + 2 * Np * Hp * Cp,
            transcendentals=0,
            bytes_accessed=Np * Np * mm + sup_reads + Hp * Cp * mm
            + 2 * Np * Hp * 4 + Np * Cp * mm,
        ),
    )(adjp, s1, b1p, w2p)


# ---------------------------------------------------------------------------
# Kernel 3 (layer 2): pre2 = adj @ s2 + b2 ; masked log_softmax over valid lanes
# ---------------------------------------------------------------------------
def _layer2_kernel(adj_ref, s_ref, b_ref, pre_ref, act_ref,
                   *, tk, resident_support, valid_cols):
    k = pl.program_id(1)

    @pl.when(k == 0)
    def _():
        pre_ref[...] = jnp.zeros_like(pre_ref)

    if resident_support:
        off = pl.multiple_of(k * tk, tk)
        s_tile = s_ref[pl.ds(off, tk), :]
    else:
        s_tile = s_ref[...]

    pre_ref[...] += jnp.dot(adj_ref[...], s_tile,
                            preferred_element_type=jnp.float32)

    @pl.when(k == pl.num_programs(1) - 1)
    def _():
        out = pre_ref[...] + b_ref[...]
        pre_ref[...] = out
        # Masked, max-stabilized log_softmax over the first `valid_cols` lanes.
        col = jax.lax.broadcasted_iota(jnp.int32, out.shape, 1)
        valid = col < valid_cols
        masked = jnp.where(valid, out, -jnp.inf)
        m = jnp.max(masked, axis=-1, keepdims=True)
        z = out - m
        ez = jnp.where(valid, jnp.exp(z), 0.0)
        lse = jnp.log(jnp.sum(ez, axis=-1, keepdims=True))
        act_ref[...] = z - lse


def _layer2_aggregate(adjp, s2, b2p, tm, tk, *, resident, valid_cols):
    Np = adjp.shape[0]
    Cp = s2.shape[1]
    mm = adjp.dtype.itemsize
    sup_reads = Np * Cp * mm if resident else (Np // tm) * Np * Cp * mm
    kernel = functools.partial(_layer2_kernel, tk=tk,
                               resident_support=resident, valid_cols=valid_cols)
    return pl.pallas_call(
        kernel,
        out_shape=(
            jax.ShapeDtypeStruct((Np, Cp), jnp.float32),   # pre2
            jax.ShapeDtypeStruct((Np, Cp), jnp.float32),   # log_softmax(pre2)
        ),
        grid_spec=pltpu.PrefetchScalarGridSpec(
            num_scalar_prefetch=0,
            grid=(Np // tm, Np // tk),
            in_specs=[
                pl.BlockSpec((tm, tk), lambda i, k: (i, k)),
                _support_spec(Np, tk, Cp, resident),
                pl.BlockSpec((1, Cp), lambda i, k: (0, 0)),
            ],
            out_specs=(
                pl.BlockSpec((tm, Cp), lambda i, k: (i, 0)),
                pl.BlockSpec((tm, Cp), lambda i, k: (i, 0)),
            ),
        ),
        compiler_params=pltpu.CompilerParams(
            dimension_semantics=("parallel", "arbitrary"),
            vmem_limit_bytes=_VMEM_LIMIT_BYTES,
        ),
        cost_estimate=pl.CostEstimate(
            flops=2 * Np * Np * Cp,
            transcendentals=Np * Cp,
            bytes_accessed=Np * Np * mm + sup_reads + 2 * Np * Cp * 4,
        ),
    )(adjp, s2, b2p)


# ---------------------------------------------------------------------------
# Wrapper
# ---------------------------------------------------------------------------
@functools.partial(jax.jit, static_argnames=("matmul_dtype",))
def rawls_gcn_grad_forward(x, adj, w1, b1, w2, b2, *, matmul_dtype=jnp.bfloat16):
    """Forward of RawlsGCNGrad. Returns (pre_act_embs, embs) like the torch module.

    matmul_dtype: MXU input dtype for the adj @ support matmuls (accumulation is
    always f32). bf16 (default) halves the dominant N^2 adj HBM stream; pass
    jnp.float32 for exact parity with the f32 torch forward.
    """
    N, F = x.shape
    H = w1.shape[1]
    C = w2.shape[1]

    Np, tm, tk = _plan_tiles(N)
    Fp = _round_up(F, 128)
    Hp = _round_up(H, 128)
    Cp = _round_up(C, 128)
    tf = 512 if Fp % 512 == 0 else (256 if Fp % 256 == 0 else 128)
    mm = jnp.dtype(matmul_dtype).itemsize

    # Cast adj to the MXU dtype *before* padding (single N^2 materialization).
    adjp = _pad2(adj.astype(matmul_dtype), Np, Np)
    xp = _pad2(x.astype(jnp.float32), Np, Fp)
    w1p = _pad2(w1.astype(jnp.float32), Fp, Hp)
    b1p = _pad1(b1.astype(jnp.float32), Hp).reshape(1, Hp)
    w2p = _pad2(w2.astype(matmul_dtype), Hp, Cp)
    b2p = _pad1(b2.astype(jnp.float32), Cp).reshape(1, Cp)

    # --- layer 1: pre1 = adj @ (x @ W1) + b1 ; h1 = relu(pre1) ; s2 = h1 @ W2 ---
    s1 = _support_matmul(xp, w1p, tm, tf, matmul_dtype)              # [Np, Hp]
    res1 = _resident_fits(Np, tm, tk, Hp, Cp, mm, with_w2=True)
    pre1_p, h1_p, s2_p = _layer1_aggregate(adjp, s1, b1p, w2p, tm, tk,
                                           resident=res1)

    # --- layer 2: pre2 = adj @ s2 + b2 ; log_softmax over the valid class lanes ---
    res2 = _resident_fits(Np, tm, tk, Cp, 0, mm, with_w2=False)
    pre2_p, ls_p = _layer2_aggregate(adjp, s2_p, b2p, tm, tk,
                                     resident=res2, valid_cols=C)

    pre1 = pre1_p[:N, :H]
    h1 = h1_p[:N, :H]            # dropout(training=False) == identity
    pre2 = pre2_p[:N, :C]
    log_probs = ls_p[:N, :C]

    pre_act_embs = [pre1, pre2]
    embs = [x, h1, log_probs]
    return pre_act_embs, embs


# ---------------------------------------------------------------------------
# Deterministic parameter init (mimics GCNLayer uniform(-stdv, stdv) init)
# ---------------------------------------------------------------------------
def _init_gcn_params(key, nfeat, nhid, nclass):
    k1, k2, k3, k4 = jax.random.split(key, 4)
    stdv1 = 1.0 / jnp.sqrt(jnp.float32(nhid))
    stdv2 = 1.0 / jnp.sqrt(jnp.float32(nclass))
    w1 = jax.random.uniform(k1, (nfeat, nhid), jnp.float32, -stdv1, stdv1)
    b1 = jax.random.uniform(k2, (nhid,), jnp.float32, -stdv1, stdv1)
    w2 = jax.random.uniform(k3, (nhid, nclass), jnp.float32, -stdv2, stdv2)
    b2 = jax.random.uniform(k4, (nclass,), jnp.float32, -stdv2, stdv2)
    return w1, b1, w2, b2


# ---------------------------------------------------------------------------
# Main
# ---------------------------------------------------------------------------
if __name__ == "__main__":
    N = 64        # number of nodes
    NFEAT = 32    # input feature dim
    NHID = 32     # hidden dim
    NCLASS = 8    # number of classes

    key = jax.random.PRNGKey(0)
    kx, kadj, kparams = jax.random.split(key, 3)

    x = jax.random.normal(kx, (N, NFEAT), jnp.float32)

    # Synthetic symmetric row-normalized adjacency (dense).
    a = jax.random.uniform(kadj, (N, N), jnp.float32)
    a = (a > 0.8).astype(jnp.float32)
    a = jnp.maximum(a, a.T) + jnp.eye(N, dtype=jnp.float32)
    deg = jnp.sum(a, axis=1, keepdims=True)
    adj = a / deg

    w1, b1, w2, b2 = _init_gcn_params(kparams, NFEAT, NHID, NCLASS)

    # Plain-JAX reference.
    ref_pre1 = adj @ (x @ w1) + b1[None, :]
    ref_h1 = jnp.maximum(ref_pre1, 0.0)
    ref_pre2 = adj @ (ref_h1 @ w2) + b2[None, :]
    ref_ls = jax.nn.log_softmax(ref_pre2, axis=1)

    # --- f32 MXU inputs: exact parity with the torch/f32 forward -------------
    pre_f32, embs_f32 = rawls_gcn_grad_forward(x, adj, w1, b1, w2, b2,
                                               matmul_dtype=jnp.float32)
    jax.block_until_ready(pre_f32)
    jax.block_until_ready(embs_f32)
    assert jnp.allclose(pre_f32[0], ref_pre1, atol=5e-4, rtol=5e-4)
    assert jnp.allclose(pre_f32[1], ref_pre2, atol=5e-4, rtol=5e-4)
    assert jnp.allclose(embs_f32[1], ref_h1, atol=5e-4, rtol=5e-4)
    assert jnp.allclose(embs_f32[2], ref_ls, atol=5e-4, rtol=5e-4)

    # --- bf16 MXU inputs (default fast path), f32 accumulation ----------------
    pre_bf, embs_bf = rawls_gcn_grad_forward(x, adj, w1, b1, w2, b2)
    jax.block_until_ready(pre_bf)
    jax.block_until_ready(embs_bf)
    assert jnp.allclose(pre_bf[0], ref_pre1, atol=7.5e-2, rtol=7.5e-2)
    assert jnp.allclose(pre_bf[1], ref_pre2, atol=7.5e-2, rtol=7.5e-2)
    assert jnp.allclose(embs_bf[1], ref_h1, atol=7.5e-2, rtol=7.5e-2)
    assert jnp.allclose(embs_bf[2], ref_ls, atol=7.5e-2, rtol=7.5e-2)

    print("KERNEL_OK")
</pallas_src>

<mosaic_0001>
module attributes {stable_mosaic.version = 11 : i64} {
  func.func @_support_kernel(%arg0: i32, %arg1: i32, %arg2: memref<128x128xf32, #tpu.memory_space<vmem>>, %arg3: memref<128x128xf32, #tpu.memory_space<vmem>>, %arg4: memref<128x128xf32, #tpu.memory_space<vmem>>, %arg5: memref<128x128xf32, #tpu.memory_space<vmem>>) attributes {dimension_semantics = [#tpu.dimension_semantics<parallel>, #tpu.dimension_semantics<arbitrary>], iteration_bounds = array<i64: 1, 1>, scalar_prefetch = 0 : i64, scratch_operands = 1 : i64, tpu.core_type = #tpu.core_type<tc>, window_params = [{transform_indices = @transform_0, window_bounds = array<i64: 128, 128>}, {transform_indices = @transform_1, window_bounds = array<i64: 128, 128>}, {transform_indices = @transform_2, window_bounds = array<i64: 128, 128>}]} {
    %c0_i32 = arith.constant 0 : i32
    %0 = arith.cmpi eq, %arg1, %c0_i32 : i32
    %1 = arith.extui %0 : i1 to i32
    %c0_i32_0 = arith.constant 0 : i32
    %2 = arith.cmpi ne, %1, %c0_i32_0 : i32
    scf.if %2 {
      %cst_10 = arith.constant 0.000000e+00 : f32
      %12 = vector.broadcast %cst_10 : f32 to vector<128x128xf32>
      %c0_11 = arith.constant 0 : index
      %c0_12 = arith.constant 0 : index
      %13 = vector.load %arg5[%c0_11, %c0_12] : memref<128x128xf32, #tpu.memory_space<vmem>>, vector<128x128xf32>
      tpu.vector_store %arg5[%c0_11, %c0_12], %12 {strides = array<i32>} : memref<128x128xf32, #tpu.memory_space<vmem>>, vector<128x128xf32>,
    } else {
    }
    %c0 = arith.constant 0 : index
    %c0_1 = arith.constant 0 : index
    %3 = vector.load %arg5[%c0, %c0_1] : memref<128x128xf32, #tpu.memory_space<vmem>>, vector<128x128xf32>
    %c0_2 = arith.constant 0 : index
    %c0_3 = arith.constant 0 : index
    %4 = vector.load %arg2[%c0_2, %c0_3] : memref<128x128xf32, #tpu.memory_space<vmem>>, vector<128x128xf32>
    %c0_4 = arith.constant 0 : index
    %c0_5 = arith.constant 0 : index
    %5 = vector.load %arg3[%c0_4, %c0_5] : memref<128x128xf32, #tpu.memory_space<vmem>>, vector<128x128xf32>
    %cst = arith.constant dense<0.000000e+00> : vector<128x128xf32>
    %6 = tpu.matmul %4, %5, %cst {dimension_numbers = #tpu.dot_dimension_numbers<[1], [0], [0], [1], [0, 0, 1, 1], [], []>} : vector<128x128xf32>, vector<128x128xf32>, vector<128x128xf32> -> vector<128x128xf32>
    %7 = arith.addf %3, %6 : vector<128x128xf32>
    %c0_6 = arith.constant 0 : index
    %c0_7 = arith.constant 0 : index
    %8 = vector.load %arg5[%c0_6, %c0_7] : memref<128x128xf32, #tpu.memory_space<vmem>>, vector<128x128xf32>
    tpu.vector_store %arg5[%c0_6, %c0_7], %7 {strides = array<i32>} : memref<128x128xf32, #tpu.memory_space<vmem>>, vector<128x128xf32>,
    %c0_i32_8 = arith.constant 0 : i32
    %9 = arith.cmpi eq, %arg1, %c0_i32_8 : i32
    %10 = arith.extui %9 : i1 to i32
    %c0_i32_9 = arith.constant 0 : i32
    %11 = arith.cmpi ne, %10, %c0_i32_9 : i32
    scf.if %11 {
      %c0_10 = arith.constant 0 : index
      %c0_11 = arith.constant 0 : index
      %12 = vector.load %arg5[%c0_10, %c0_11] : memref<128x128xf32, #tpu.memory_space<vmem>>, vector<128x128xf32>
      %c0_12 = arith.constant 0 : index
      %c0_13 = arith.constant 0 : index
      %13 = vector.load %arg4[%c0_12, %c0_13] : memref<128x128xf32, #tpu.memory_space<vmem>>, vector<128x128xf32>
      tpu.vector_store %arg4[%c0_12, %c0_13], %12 {strides = array<i32>} : memref<128x128xf32, #tpu.memory_space<vmem>>, vector<128x128xf32>,
    } else {
    }
    return
  }
  func.func @transform_0(%arg0: i32, %arg1: i32) -> (i32, i32) {
    %c0_i32 = arith.constant 0 : i32
    return %arg0, %arg1 : i32, i32
  }
  func.func @transform_1(%arg0: i32, %arg1: i32) -> (i32, i32) {
    %c0_i32 = arith.constant 0 : i32
    %c0_i32_0 = arith.constant 0 : i32
    return %arg1, %c0_i32 : i32, i32
  }
  func.func @transform_2(%arg0: i32, %arg1: i32) -> (i32, i32) {
    %c0_i32 = arith.constant 0 : i32
    %c0_i32_0 = arith.constant 0 : i32
    return %arg0, %c0_i32 : i32, i32
  }
}

module attributes {stable_mosaic.version = 11 : i64} {
  func.func @_layer1_kernel(%arg0: i32, %arg1: i32, %arg2: memref<128x128xf32, #tpu.memory_space<vmem>>, %arg3: memref<128x128xf32, #tpu.memory_space<vmem>>, %arg4: memref<1x128xf32, #tpu.memory_space<vmem>>, %arg5: memref<128x128xf32, #tpu.memory_space<vmem>>, %arg6: memref<128x128xf32, #tpu.memory_space<vmem>>, %arg7: memref<128x128xf32, #tpu.memory_space<vmem>>, %arg8: memref<128x128xf32, #tpu.memory_space<vmem>>) attributes {dimension_semantics = [#tpu.dimension_semantics<parallel>, #tpu.dimension_semantics<arbitrary>], iteration_bounds = array<i64: 1, 1>, scalar_prefetch = 0 : i64, scratch_operands = 0 : i64, tpu.core_type = #tpu.core_type<tc>, window_params = [{transform_indices = @transform_0, window_bounds = array<i64: 128, 128>}, {pipeline_mode = #tpu.pipeline_mode<synchronous>, transform_indices = @transform_1, window_bounds = array<i64: 128, 128>}, {pipeline_mode = #tpu.pipeline_mode<synchronous>, transform_indices = @transform_2, window_bounds = array<i64: 1, 128>}, {pipeline_mode = #tpu.pipeline_mode<synchronous>, transform_indices = @transform_3, window_bounds = array<i64: 128, 128>}, {transform_indices = @transform_4, window_bounds = array<i64: 128, 128>}, {transform_indices = @transform_5, window_bounds = array<i64: 128, 128>}, {transform_indices = @transform_6, window_bounds = array<i64: 128, 128>}]} {
    %c0_i32 = arith.constant 0 : i32
    %0 = arith.cmpi eq, %arg1, %c0_i32 : i32
    %1 = arith.extui %0 : i1 to i32
    %c0_i32_0 = arith.constant 0 : i32
    %2 = arith.cmpi ne, %1, %c0_i32_0 : i32
    scf.if %2 {
      %cst_9 = arith.constant 0.000000e+00 : f32
      %15 = vector.broadcast %cst_9 : f32 to vector<128x128xf32>
      %c0_10 = arith.constant 0 : index
      %c0_11 = arith.constant 0 : index
      %16 = vector.load %arg6[%c0_10, %c0_11] : memref<128x128xf32, #tpu.memory_space<vmem>>, vector<128x128xf32>
      tpu.vector_store %arg6[%c0_10, %c0_11], %15 {strides = array<i32>} : memref<128x128xf32, #tpu.memory_space<vmem>>, vector<128x128xf32>,
    } else {
    }
    %c128_i32 = arith.constant 128 : i32
    %3 = arith.muli %arg1, %c128_i32 : i32
    %4 = tpu.assume_multiple %3, 128 : i32
    %5 = arith.index_cast %4 : i32 to index
    %c0 = arith.constant 0 : index
    %6 = vector.load %arg3[%5, %c0] : memref<128x128xf32, #tpu.memory_space<vmem>>, vector<128x128xf32>
    %c0_1 = arith.constant 0 : index
    %c0_2 = arith.constant 0 : index
    %7 = vector.load %arg6[%c0_1, %c0_2] : memref<128x128xf32, #tpu.memory_space<vmem>>, vector<128x128xf32>
    %c0_3 = arith.constant 0 : index
    %c0_4 = arith.constant 0 : index
    %8 = vector.load %arg2[%c0_3, %c0_4] : memref<128x128xf32, #tpu.memory_space<vmem>>, vector<128x128xf32>
    %cst = arith.constant dense<0.000000e+00> : vector<128x128xf32>
    %9 = tpu.matmul %8, %6, %cst {dimension_numbers = #tpu.dot_dimension_numbers<[1], [0], [0], [1], [0, 0, 1, 1], [], []>} : vector<128x128xf32>, vector<128x128xf32>, vector<128x128xf32> -> vector<128x128xf32>
    %10 = arith.addf %7, %9 : vector<128x128xf32>
    %c0_5 = arith.constant 0 : index
    %c0_6 = arith.constant 0 : index
    %11 = vector.load %arg6[%c0_5, %c0_6] : memref<128x128xf32, #tpu.memory_space<vmem>>, vector<128x128xf32>
    tpu.vector_store %arg6[%c0_5, %c0_6], %10 {strides = array<i32>} : memref<128x128xf32, #tpu.memory_space<vmem>>, vector<128x128xf32>,
    %c0_i32_7 = arith.constant 0 : i32
    %12 = arith.cmpi eq, %arg1, %c0_i32_7 : i32
    %13 = arith.extui %12 : i1 to i32
    %c0_i32_8 = arith.constant 0 : i32
    %14 = arith.cmpi ne, %13, %c0_i32_8 : i32
    scf.if %14 {
      %c0_9 = arith.constant 0 : index
      %c0_10 = arith.constant 0 : index
      %15 = vector.load %arg6[%c0_9, %c0_10] : memref<128x128xf32, #tpu.memory_space<vmem>>, vector<128x128xf32>
      %c0_11 = arith.constant 0 : index
      %c0_12 = arith.constant 0 : index
      %16 = vector.load %arg4[%c0_11, %c0_12] : memref<1x128xf32, #tpu.memory_space<vmem>>, vector<1x128xf32>
      %17 = vector.broadcast %16 : vector<1x128xf32> to vector<128x128xf32>
      %18 = arith.addf %15, %17 : vector<128x128xf32>
      %c0_13 = arith.constant 0 : index
      %c0_14 = arith.constant 0 : index
      %19 = vector.load %arg6[%c0_13, %c0_14] : memref<128x128xf32, #tpu.memory_space<vmem>>, vector<128x128xf32>
      tpu.vector_store %arg6[%c0_13, %c0_14], %18 {strides = array<i32>} : memref<128x128xf32, #tpu.memory_space<vmem>>, vector<128x128xf32>,
      %cst_15 = arith.constant 0.000000e+00 : f32
      %20 = vector.broadcast %cst_15 : f32 to vector<128x128xf32>
      %21 = arith.maximumf %18, %20 : vector<128x128xf32>
      %c0_16 = arith.constant 0 : index
      %c0_17 = arith.constant 0 : index
      %22 = vector.load %arg7[%c0_16, %c0_17] : memref<128x128xf32, #tpu.memory_space<vmem>>, vector<128x128xf32>
      tpu.vector_store %arg7[%c0_16, %c0_17], %21 {strides = array<i32>} : memref<128x128xf32, #tpu.memory_space<vmem>>, vector<128x128xf32>,
      %c0_18 = arith.constant 0 : index
      %c0_19 = arith.constant 0 : index
      %23 = vector.load %arg5[%c0_18, %c0_19] : memref<128x128xf32, #tpu.memory_space<vmem>>, vector<128x128xf32>
      %cst_20 = arith.constant dense<0.000000e+00> : vector<128x128xf32>
      %24 = tpu.matmul %21, %23, %cst_20 {dimension_numbers = #tpu.dot_dimension_numbers<[1], [0], [0], [1], [0, 0, 1, 1], [], []>} : vector<128x128xf32>, vector<128x128xf32>, vector<128x128xf32> -> vector<128x128xf32>
      %c0_21 = arith.constant 0 : index
      %c0_22 = arith.constant 0 : index
      %25 = vector.load %arg8[%c0_21, %c0_22] : memref<128x128xf32, #tpu.memory_space<vmem>>, vector<128x128xf32>
      tpu.vector_store %arg8[%c0_21, %c0_22], %24 {strides = array<i32>} : memref<128x128xf32, #tpu.memory_space<vmem>>, vector<128x128xf32>,
    } else {
    }
    return
  }
  func.func @transform_0(%arg0: i32, %arg1: i32) -> (i32, i32) {
    %c0_i32 = arith.constant 0 : i32
    return %arg0, %arg1 : i32, i32
  }
  func.func @transform_1(%arg0: i32, %arg1: i32) -> (i32, i32) {
    %c0_i32 = arith.constant 0 : i32
    %c0_i32_0 = arith.constant 0 : i32
    %c0_i32_1 = arith.constant 0 : i32
    return %c0_i32, %c0_i32_0 : i32, i32
  }
  func.func @transform_2(%arg0: i32, %arg1: i32) -> (i32, i32) {
    %c0_i32 = arith.constant 0 : i32
    %c0_i32_0 = arith.constant 0 : i32
    %c0_i32_1 = arith.constant 0 : i32
    return %c0_i32, %c0_i32_0 : i32, i32
  }
  func.func @transform_3(%arg0: i32, %arg1: i32) -> (i32, i32) {
    %c0_i32 = arith.constant 0 : i32
    %c0_i32_0 = arith.constant 0 : i32
    %c0_i32_1 = arith.constant 0 : i32
    return %c0_i32, %c0_i32_0 : i32, i32
  }
  func.func @transform_4(%arg0: i32, %arg1: i32) -> (i32, i32) {
    %c0_i32 = arith.constant 0 : i32
    %c0_i32_0 = arith.constant 0 : i32
    return %arg0, %c0_i32 : i32, i32
  }
  func.func @transform_5(%arg0: i32, %arg1: i32) -> (i32, i32) {
    %c0_i32 = arith.constant 0 : i32
    %c0_i32_0 = arith.constant 0 : i32
    return %arg0, %c0_i32 : i32, i32
  }
  func.func @transform_6(%arg0: i32, %arg1: i32) -> (i32, i32) {
    %c0_i32 = arith.constant 0 : i32
    %c0_i32_0 = arith.constant 0 : i32
    return %arg0, %c0_i32 : i32, i32
  }
}

module attributes {stable_mosaic.version = 11 : i64} {
  func.func @_layer2_kernel(%arg0: i32, %arg1: i32, %arg2: memref<128x128xf32, #tpu.memory_space<vmem>>, %arg3: memref<128x128xf32, #tpu.memory_space<vmem>>, %arg4: memref<1x128xf32, #tpu.memory_space<vmem>>, %arg5: memref<128x128xf32, #tpu.memory_space<vmem>>, %arg6: memref<128x128xf32, #tpu.memory_space<vmem>>) attributes {dimension_semantics = [#tpu.dimension_semantics<parallel>, #tpu.dimension_semantics<arbitrary>], iteration_bounds = array<i64: 1, 1>, scalar_prefetch = 0 : i64, scratch_operands = 0 : i64, tpu.core_type = #tpu.core_type<tc>, window_params = [{transform_indices = @transform_0, window_bounds = array<i64: 128, 128>}, {pipeline_mode = #tpu.pipeline_mode<synchronous>, transform_indices = @transform_1, window_bounds = array<i64: 128, 128>}, {pipeline_mode = #tpu.pipeline_mode<synchronous>, transform_indices = @transform_2, window_bounds = array<i64: 1, 128>}, {transform_indices = @transform_3, window_bounds = array<i64: 128, 128>}, {transform_indices = @transform_4, window_bounds = array<i64: 128, 128>}]} {
    %c0_i32 = arith.constant 0 : i32
    %0 = arith.cmpi eq, %arg1, %c0_i32 : i32
    %1 = arith.extui %0 : i1 to i32
    %c0_i32_0 = arith.constant 0 : i32
    %2 = arith.cmpi ne, %1, %c0_i32_0 : i32
    scf.if %2 {
      %cst_9 = arith.constant 0.000000e+00 : f32
      %15 = vector.broadcast %cst_9 : f32 to vector<128x128xf32>
      %c0_10 = arith.constant 0 : index
      %c0_11 = arith.constant 0 : index
      %16 = vector.load %arg5[%c0_10, %c0_11] : memref<128x128xf32, #tpu.memory_space<vmem>>, vector<128x128xf32>
      tpu.vector_store %arg5[%c0_10, %c0_11], %15 {strides = array<i32>} : memref<128x128xf32, #tpu.memory_space<vmem>>, vector<128x128xf32>,
    } else {
    }
    %c128_i32 = arith.constant 128 : i32
    %3 = arith.muli %arg1, %c128_i32 : i32
    %4 = tpu.assume_multiple %3, 128 : i32
    %5 = arith.index_cast %4 : i32 to index
    %c0 = arith.constant 0 : index
    %6 = vector.load %arg3[%5, %c0] : memref<128x128xf32, #tpu.memory_space<vmem>>, vector<128x128xf32>
    %c0_1 = arith.constant 0 : index
    %c0_2 = arith.constant 0 : index
    %7 = vector.load %arg5[%c0_1, %c0_2] : memref<128x128xf32, #tpu.memory_space<vmem>>, vector<128x128xf32>
    %c0_3 = arith.constant 0 : index
    %c0_4 = arith.constant 0 : index
    %8 = vector.load %arg2[%c0_3, %c0_4] : memref<128x128xf32, #tpu.memory_space<vmem>>, vector<128x128xf32>
    %cst = arith.constant dense<0.000000e+00> : vector<128x128xf32>
    %9 = tpu.matmul %8, %6, %cst {dimension_numbers = #tpu.dot_dimension_numbers<[1], [0], [0], [1], [0, 0, 1, 1], [], []>} : vector<128x128xf32>, vector<128x128xf32>, vector<128x128xf32> -> vector<128x128xf32>
    %10 = arith.addf %7, %9 : vector<128x128xf32>
    %c0_5 = arith.constant 0 : index
    %c0_6 = arith.constant 0 : index
    %11 = vector.load %arg5[%c0_5, %c0_6] : memref<128x128xf32, #tpu.memory_space<vmem>>, vector<128x128xf32>
    tpu.vector_store %arg5[%c0_5, %c0_6], %10 {strides = array<i32>} : memref<128x128xf32, #tpu.memory_space<vmem>>, vector<128x128xf32>,
    %c0_i32_7 = arith.constant 0 : i32
    %12 = arith.cmpi eq, %arg1, %c0_i32_7 : i32
    %13 = arith.extui %12 : i1 to i32
    %c0_i32_8 = arith.constant 0 : i32
    %14 = arith.cmpi ne, %13, %c0_i32_8 : i32
    scf.if %14 {
      %c0_9 = arith.constant 0 : index
      %c0_10 = arith.constant 0 : index
      %15 = vector.load %arg5[%c0_9, %c0_10] : memref<128x128xf32, #tpu.memory_space<vmem>>, vector<128x128xf32>
      %c0_11 = arith.constant 0 : index
      %c0_12 = arith.constant 0 : index
      %16 = vector.load %arg4[%c0_11, %c0_12] : memref<1x128xf32, #tpu.memory_space<vmem>>, vector<1x128xf32>
      %17 = vector.broadcast %16 : vector<1x128xf32> to vector<128x128xf32>
      %18 = arith.addf %15, %17 : vector<128x128xf32>
      %c0_13 = arith.constant 0 : index
      %c0_14 = arith.constant 0 : index
      %19 = vector.load %arg5[%c0_13, %c0_14] : memref<128x128xf32, #tpu.memory_space<vmem>>, vector<128x128xf32>
      tpu.vector_store %arg5[%c0_13, %c0_14], %18 {strides = array<i32>} : memref<128x128xf32, #tpu.memory_space<vmem>>, vector<128x128xf32>,
      %20 = tpu.iota {dimensions = array<i32: 1>} : vector<128x128xi32>
      %c8_i32 = arith.constant 8 : i32
      %21 = vector.broadcast %c8_i32 : i32 to vector<128x128xi32>
      %22 = arith.cmpi slt, %20, %21 : vector<128x128xi32>
      %cst_15 = arith.constant 0xFF800000 : f32
      %23 = vector.broadcast %cst_15 : f32 to vector<128x128xf32>
      %24 = arith.select %22, %18, %23 : vector<128x128xi1>, vector<128x128xf32>
      %cst_16 = arith.constant dense<0xFF800000> : vector<128xf32>
      %25 = vector.multi_reduction <maximumf>, %24, %cst_16 [1] : vector<128x128xf32> to vector<128xf32>
      %26 = vector.shape_cast %25 : vector<128xf32> to vector<128x1xf32>
      %27 = vector.broadcast %26 : vector<128x1xf32> to vector<128x128xf32>
      %28 = arith.subf %18, %27 : vector<128x128xf32>
      %29 = math.exp %28 : vector<128x128xf32>
      %cst_17 = arith.constant 0.000000e+00 : f32
      %30 = vector.broadcast %cst_17 : f32 to vector<128x128xf32>
      %31 = arith.select %22, %29, %30 : vector<128x128xi1>, vector<128x128xf32>
      %cst_18 = arith.constant dense<0.000000e+00> : vector<128xf32>
      %32 = vector.multi_reduction <add>, %31, %cst_18 [1] : vector<128x128xf32> to vector<128xf32>
      %33 = vector.shape_cast %32 : vector<128xf32> to vector<128x1xf32>
      %34 = math.log %33 : vector<128x1xf32>
      %35 = vector.broadcast %34 : vector<128x1xf32> to vector<128x128xf32>
      %36 = arith.subf %28, %35 : vector<128x128xf32>
      %c0_19 = arith.constant 0 : index
      %c0_20 = arith.constant 0 : index
      %37 = vector.load %arg6[%c0_19, %c0_20] : memref<128x128xf32, #tpu.memory_space<vmem>>, vector<128x128xf32>
      tpu.vector_store %arg6[%c0_19, %c0_20], %36 {strides = array<i32>} : memref<128x128xf32, #tpu.memory_space<vmem>>, vector<128x128xf32>,
    } else {
    }
    return
  }
  func.func @transform_0(%arg0: i32, %arg1: i32) -> (i32, i32) {
    %c0_i32 = arith.constant 0 : i32
    return %arg0, %arg1 : i32, i32
  }
  func.func @transform_1(%arg0: i32, %arg1: i32) -> (i32, i32) {
    %c0_i32 = arith.constant 0 : i32
    %c0_i32_0 = arith.constant 0 : i32
    %c0_i32_1 = arith.constant 0 : i32
    return %c0_i32, %c0_i32_0 : i32, i32
  }
  func.func @transform_2(%arg0: i32, %arg1: i32) -> (i32, i32) {
    %c0_i32 = arith.constant 0 : i32
    %c0_i32_0 = arith.constant 0 : i32
    %c0_i32_1 = arith.constant 0 : i32
    return %c0_i32, %c0_i32_0 : i32, i32
  }
  func.func @transform_3(%arg0: i32, %arg1: i32) -> (i32, i32) {
    %c0_i32 = arith.constant 0 : i32
    %c0_i32_0 = arith.constant 0 : i32
    return %arg0, %c0_i32 : i32, i32
  }
  func.func @transform_4(%arg0: i32, %arg1: i32) -> (i32, i32) {
    %c0_i32 = arith.constant 0 : i32
    %c0_i32_0 = arith.constant 0 : i32
    return %arg0, %c0_i32 : i32, i32
  }
}

</mosaic_0001>

<bundles_post_ra>
// kernel: rawls_gcn_grad_forward.3
= control target key start
LH: loop header
LB: loop body
LE: loop exit
PB: predicated region body
PF: predicated region fallthrough
CT: control target
= control target key end

     0   :  { %s422_s1 = inlined_call_operand.vmem [shape: f32[128,128], index: 1, kind: input, shape index: {}]   ;;  %s423_s0 = inlined_call_operand.vmem [shape: f32[128,128], index: 0, kind: input, shape index: {}]   ;;  %s424_s2 = inlined_call_operand.vmem [shape: f32[128,128], index: 2, kind: output, shape index: {}]  }
   0x1   :  { %v78_v0 = vld [vmem:[%s422_s1 + $0x78] sm:$0xff]  ;;  %v77_v1 = vld [vmem:[%s422_s1 + $0x70] sm:$0xff]  ;;  %v76_v2 = vld [vmem:[%s422_s1 + $0x68] sm:$0xff] }
   0x2   :  { %216 = vmatpush.msra.mxu2 %v78_v0  ;;  %217 = vmatpush.msra.mxu3 %v78_v0  ;;  %v75_v3 = vld [vmem:[%s422_s1 + $0x60] sm:$0xff]  ;;  %v74_v4 = vld [vmem:[%s422_s1 + $0x58] sm:$0xff]  ;;  %v73_v5 = vld [vmem:[%s422_s1 + $0x50] sm:$0xff] }
   0x3   :  { %79 = vmatpush.msra.mxu0 %v78_v0  ;;  %215 = vmatpush.msra.mxu1 %v78_v0  ;;  %v72_v6 = vld [vmem:[%s422_s1 + $0x48] sm:$0xff]  ;;  %v71_v7 = vld [vmem:[%s422_s1 + $0x40] sm:$0xff]  ;;  %v70_v8 = vld [vmem:[%s422_s1 + $0x38] sm:$0xff] }
   0x4   :  { %219 = vmatpush.msra.mxu2 %v77_v1  ;;  %220 = vmatpush.msra.mxu3 %v77_v1  ;;  %v69_v9 = vld [vmem:[%s422_s1 + $0x30] sm:$0xff]  ;;  %v68_v10 = vld [vmem:[%s422_s1 + $0x28] sm:$0xff]  ;;  %v67_v11 = vld [vmem:[%s422_s1 + $0x20] sm:$0xff] }
   0x5   :  { %80 = vmatpush.msra.mxu0 %v77_v1  ;;  %218 = vmatpush.msra.mxu1 %v77_v1  ;;  %v66_v12 = vld [vmem:[%s422_s1 + $0x18] sm:$0xff]  ;;  %v65_v13 = vld [vmem:[%s422_s1 + $0x10] sm:$0xff]  ;;  %v64_v14 = vld [vmem:[%s422_s1 + $0x8] sm:$0xff] }
   0x6   :  { %222 = vmatpush.msra.mxu2 %v76_v2  ;;  %223 = vmatpush.msra.mxu3 %v76_v2  ;;  %v63_v15 = vld [vmem:[%s422_s1] sm:$0xff]  ;;  %v56_v20 = vld [vmem:[%s423_s0 + $0x48] sm:$0xff]  ;;  %v57_v24 = vld [vmem:[%s423_s0 + $0x50] sm:$0xff] }
   0x7   :  { %81 = vmatpush.msra.mxu0 %v76_v2  ;;  %221 = vmatpush.msra.mxu1 %v76_v2  ;;  %v55_v16 = vld [vmem:[%s423_s0 + $0x40] sm:$0xff]  ;;  %v60_v21 = vld [vmem:[%s423_s0 + $0x68] sm:$0xff]  ;;  %v61_v25 = vld [vmem:[%s423_s0 + $0x70] sm:$0xff] }
   0x8   :  { %225 = vmatpush.msra.mxu2 %v75_v3  ;;  %226 = vmatpush.msra.mxu3 %v75_v3  ;;  %v59_v17 = vld [vmem:[%s423_s0 + $0x60] sm:$0xff]  ;;  %v48_v22 = vld [vmem:[%s423_s0 + $0x8] sm:$0xff]  ;;  %v49_v26 = vld [vmem:[%s423_s0 + $0x10] sm:$0xff] }
   0x9   :  { %82 = vmatpush.msra.mxu0 %v75_v3  ;;  %224 = vmatpush.msra.mxu1 %v75_v3  ;;  %v47_v18 = vld [vmem:[%s423_s0] sm:$0xff]  ;;  %v52_v23 = vld [vmem:[%s423_s0 + $0x28] sm:$0xff]  ;;  %v53_v27 = vld [vmem:[%s423_s0 + $0x30] sm:$0xff] }
   0xa   :  { %228 = vmatpush.msra.mxu2 %v74_v4  ;;  %229 = vmatpush.msra.mxu3 %v74_v4  ;;  %v51_v19 = vld [vmem:[%s423_s0 + $0x20] sm:$0xff]  ;;  %v58_v28 = vld [vmem:[%s423_s0 + $0x58] sm:$0xff] }
   0xb   :  { %83 = vmatpush.msra.mxu0 %v74_v4  ;;  %227 = vmatpush.msra.mxu1 %v74_v4  ;;  %v62_v29 = vld [vmem:[%s423_s0 + $0x78] sm:$0xff] }
   0xc   :  { %231 = vmatpush.msra.mxu2 %v73_v5  ;;  %232 = vmatpush.msra.mxu3 %v73_v5  ;;  %v50_v30 = vld [vmem:[%s423_s0 + $0x18] sm:$0xff] }
   0xd   :  { %84 = vmatpush.msra.mxu0 %v73_v5  ;;  %230 = vmatpush.msra.mxu1 %v73_v5  ;;  %v54_v31 = vld [vmem:[%s423_s0 + $0x38] sm:$0xff] }
   0xe   :  { %234 = vmatpush.msra.mxu2 %v72_v6  ;;  %235 = vmatpush.msra.mxu3 %v72_v6 }
   0xf   :  { %85 = vmatpush.msra.mxu0 %v72_v6  ;;  %233 = vmatpush.msra.mxu1 %v72_v6 }
  0x10   :  { %237 = vmatpush.msra.mxu2 %v71_v7  ;;  %238 = vmatpush.msra.mxu3 %v71_v7 }
  0x11   :  { %86 = vmatpush.msra.mxu0 %v71_v7  ;;  %236 = vmatpush.msra.mxu1 %v71_v7 }
  0x12   :  { %240 = vmatpush.msra.mxu2 %v70_v8  ;;  %241 = vmatpush.msra.mxu3 %v70_v8 }
  0x13   :  { %87 = vmatpush.msra.mxu0 %v70_v8  ;;  %239 = vmatpush.msra.mxu1 %v70_v8 }
  0x14   :  { %243 = vmatpush.msra.mxu2 %v69_v9  ;;  %244 = vmatpush.msra.mxu3 %v69_v9 }
  0x15   :  { %88 = vmatpush.msra.mxu0 %v69_v9  ;;  %242 = vmatpush.msra.mxu1 %v69_v9 }
  0x16   :  { %246 = vmatpush.msra.mxu2 %v68_v10  ;;  %247 = vmatpush.msra.mxu3 %v68_v10 }
  0x17   :  { %89 = vmatpush.msra.mxu0 %v68_v10  ;;  %245 = vmatpush.msra.mxu1 %v68_v10 }
  0x18   :  { %249 = vmatpush.msra.mxu2 %v67_v11  ;;  %250 = vmatpush.msra.mxu3 %v67_v11 }
  0x19   :  { %90 = vmatpush.msra.mxu0 %v67_v11  ;;  %248 = vmatpush.msra.mxu1 %v67_v11 }
  0x1a   :  { %252 = vmatpush.msra.mxu2 %v66_v12  ;;  %253 = vmatpush.msra.mxu3 %v66_v12 }
  0x1b   :  { %91 = vmatpush.msra.mxu0 %v66_v12  ;;  %251 = vmatpush.msra.mxu1 %v66_v12 }
  0x1c   :  { %255 = vmatpush.msra.mxu2 %v65_v13  ;;  %256 = vmatpush.msra.mxu3 %v65_v13 }
  0x1d   :  { %92 = vmatpush.msra.mxu0 %v65_v13  ;;  %254 = vmatpush.msra.mxu1 %v65_v13 }
  0x1e   :  { %258 = vmatpush.msra.mxu2 %v64_v14  ;;  %259 = vmatpush.msra.mxu3 %v64_v14 }
  0x1f   :  { %93 = vmatpush.msra.mxu0 %v64_v14  ;;  %257 = vmatpush.msra.mxu1 %v64_v14 }
  0x20   :  { %261 = vmatpush.msra.mxu2 %v63_v15  ;;  %262 = vmatpush.msra.mxu3 %v63_v15 }
  0x21   :  { %119 = vmatmul.f32.vlgmr.msra.gmra.mxu2 %v55_v16  ;;  %131 = vmatmul.f32.vlgmr.msra.gmra.mxu3 %v59_v17 }
  0x22   :  { %94 = vmatpush.msra.mxu0 %v63_v15  ;;  %260 = vmatpush.msra.mxu1 %v63_v15 }
  0x23   :  { %95 = vmatmul.f32.vlgmr.msra.gmra.mxu0 %v47_v18  ;;  %107 = vmatmul.f32.vlgmr.msra.gmra.mxu1 %v51_v19 }
  0x29   :  { %122 = vmatmul.f32.gmra.mxu2 %v56_v20  ;;  %134 = vmatmul.f32.gmra.mxu3 %v60_v21 }
  0x2b   :  { %98 = vmatmul.f32.gmra.mxu0 %v48_v22  ;;  %110 = vmatmul.f32.gmra.mxu1 %v52_v23 }
  0x31   :  { %125 = vmatmul.f32.gmra.mxu2 %v57_v24  ;;  %137 = vmatmul.f32.gmra.mxu3 %v61_v25 }
  0x33   :  { %101 = vmatmul.f32.gmra.mxu0 %v49_v26  ;;  %113 = vmatmul.f32.gmra.mxu1 %v53_v27 }
  0x39   :  { %128 = vmatmul.f32.gmra.mxu2 %v58_v28  ;;  %140 = vmatmul.f32.gmra.mxu3 %v62_v29 }
  0x3b   :  { %104 = vmatmul.f32.gmra.mxu0 %v50_v30  ;;  %116 = vmatmul.f32.gmra.mxu1 %v54_v31 }
  0xa0   :  { %v96_v32 = vpop.f32.mrf.mxu0  ;;  %v108_v33 = vpop.f32.mrf.mxu1 }
  0xa1   :  { %195 = vst [vmem:[%s424_s2] sm:$0xff] %v96_v32 }
  0xa2   :  { %199 = vst [vmem:[%s424_s2 + $0x20] sm:$0xff] %v108_v33 }
  0xa4   :  { %v120_v34 = vpop.f32.mrf.mxu2  ;;  %v132_v35 = vpop.f32.mrf.mxu3 }
  0xa5   :  { %203 = vst [vmem:[%s424_s2 + $0x40] sm:$0xff] %v120_v34 }
  0xa6   :  { %207 = vst [vmem:[%s424_s2 + $0x60] sm:$0xff] %v132_v35 }
  0xa8   :  { %v99_v36 = vpop.f32.mrf.mxu0  ;;  %v111_v37 = vpop.f32.mrf.mxu1 }
  0xa9   :  { %196 = vst [vmem:[%s424_s2 + $0x8] sm:$0xff] %v99_v36 }
  0xaa   :  { %200 = vst [vmem:[%s424_s2 + $0x28] sm:$0xff] %v111_v37 }
  0xac   :  { %v123_v38 = vpop.f32.mrf.mxu2  ;;  %v135_v39 = vpop.f32.mrf.mxu3 }
  0xad   :  { %204 = vst [vmem:[%s424_s2 + $0x48] sm:$0xff] %v123_v38 }
  0xae   :  { %208 = vst [vmem:[%s424_s2 + $0x68] sm:$0xff] %v135_v39 }
  0xb0   :  { %v102_v40 = vpop.f32.mrf.mxu0  ;;  %v114_v41 = vpop.f32.mrf.mxu1 }
  0xb1   :  { %197 = vst [vmem:[%s424_s2 + $0x10] sm:$0xff] %v102_v40 }
  0xb2   :  { %201 = vst [vmem:[%s424_s2 + $0x30] sm:$0xff] %v114_v41 }
  0xb4   :  { %v126_v42 = vpop.f32.mrf.mxu2  ;;  %v138_v43 = vpop.f32.mrf.mxu3 }
  0xb5   :  { %205 = vst [vmem:[%s424_s2 + $0x50] sm:$0xff] %v126_v42 }
  0xb6   :  { %209 = vst [vmem:[%s424_s2 + $0x70] sm:$0xff] %v138_v43 }
  0xb8   :  { %v105_v44 = vpop.f32.mrf.mxu0  ;;  %v117_v45 = vpop.f32.mrf.mxu1 }
  0xb9   :  { %198 = vst [vmem:[%s424_s2 + $0x18] sm:$0xff] %v105_v44 }
  0xba   :  { %202 = vst [vmem:[%s424_s2 + $0x38] sm:$0xff] %v117_v45 }
  0xbc   :  { %v129_v46 = vpop.f32.mrf.mxu2  ;;  %v141_v47 = vpop.f32.mrf.mxu3 }
  0xbd   :  { %206 = vst [vmem:[%s424_s2 + $0x58] sm:$0xff] %v129_v46 }
  0xbe   :  { %210 = vst [vmem:[%s424_s2 + $0x78] sm:$0xff] %v141_v47 }

// kernel: rawls_gcn_grad_forward.5
= control target key start
LH: loop header
LB: loop body
LE: loop exit
PB: predicated region body
PF: predicated region fallthrough
CT: control target
= control target key end

     0   :  { %v238_v32 = vlaneseq  ;;  %s1020_s1 = inlined_call_operand.vmem [shape: f32[128,128], index: 1, kind: input, shape index: {}]   ;;  %s1021_s0 = inlined_call_operand.vmem [shape: f32[128,128], index: 0, kind: input, shape index: {}]   ;;  %s1022_s2 = inlined_call_operand.vmem [shape: f32[1,128], index: 2, kind: input, shape index: {}]   ;;  %s1023_s3 = inlined_call_operand.vmem [shape: f32[128,128], index: 3, kind: output, shape index: {0}]   ;;  %s1024_s4 = inlined_call_operand.vmem [shape: f32[128,128], index: 4, kind: output, shape index: {1}]  }
   0x1   :  { %v53_v0 = vld [vmem:[%s1020_s1 + $0x78] sm:$0xff]  ;;  %v52_v1 = vld [vmem:[%s1020_s1 + $0x70] sm:$0xff]  ;;  %v51_v2 = vld [vmem:[%s1020_s1 + $0x68] sm:$0xff] }
   0x2   :  { %86 = vmatpush.msra.mxu0 %v53_v0  ;;  %457 = vmatpush.msra.mxu1 %v53_v0  ;;  %v50_v3 = vld [vmem:[%s1020_s1 + $0x60] sm:$0xff]  ;;  %v49_v4 = vld [vmem:[%s1020_s1 + $0x58] sm:$0xff]  ;;  %v48_v5 = vld [vmem:[%s1020_s1 + $0x50] sm:$0xff]  ;;  %v692_v33 = vand.u32 127, %v238_v32 }
   0x3   :  { %458 = vmatpush.msra.mxu2 %v53_v0  ;;  %459 = vmatpush.msra.mxu3 %v53_v0  ;;  %v47_v6 = vld [vmem:[%s1020_s1 + $0x48] sm:$0xff]  ;;  %v46_v7 = vld [vmem:[%s1020_s1 + $0x40] sm:$0xff]  ;;  %v45_v8 = vld [vmem:[%s1020_s1 + $0x38] sm:$0xff] }
   0x4   :  { %87 = vmatpush.msra.mxu0 %v52_v1  ;;  %460 = vmatpush.msra.mxu1 %v52_v1  ;;  %v44_v9 = vld [vmem:[%s1020_s1 + $0x30] sm:$0xff]  ;;  %v43_v10 = vld [vmem:[%s1020_s1 + $0x28] sm:$0xff]  ;;  %v42_v11 = vld [vmem:[%s1020_s1 + $0x20] sm:$0xff]  ;;  %vm240_vm0 = vcmp.lt.s32.totalorder %v692_v33, 8 }
   0x5   :  { %461 = vmatpush.msra.mxu2 %v52_v1  ;;  %462 = vmatpush.msra.mxu3 %v52_v1  ;;  %v41_v12 = vld [vmem:[%s1020_s1 + $0x18] sm:$0xff]  ;;  %v40_v13 = vld [vmem:[%s1020_s1 + $0x10] sm:$0xff]  ;;  %v39_v14 = vld [vmem:[%s1020_s1 + $0x8] sm:$0xff] }
   0x6   :  { %88 = vmatpush.msra.mxu0 %v51_v2  ;;  %463 = vmatpush.msra.mxu1 %v51_v2  ;;  %v38_v15 = vld [vmem:[%s1020_s1] sm:$0xff]  ;;  %v71_v20 = vld [vmem:[%s1021_s0 + $0x8] sm:$0xff]  ;;  %v72_v24 = vld [vmem:[%s1021_s0 + $0x10] sm:$0xff] }
   0x7   :  { %464 = vmatpush.msra.mxu2 %v51_v2  ;;  %465 = vmatpush.msra.mxu3 %v51_v2  ;;  %v70_v16 = vld [vmem:[%s1021_s0] sm:$0xff]  ;;  %v79_v21 = vld [vmem:[%s1021_s0 + $0x48] sm:$0xff]  ;;  %v80_v25 = vld [vmem:[%s1021_s0 + $0x50] sm:$0xff] }
   0x8   :  { %89 = vmatpush.msra.mxu0 %v50_v3  ;;  %466 = vmatpush.msra.mxu1 %v50_v3  ;;  %v74_v17 = vld [vmem:[%s1021_s0 + $0x20] sm:$0xff]  ;;  %v75_v22 = vld [vmem:[%s1021_s0 + $0x28] sm:$0xff]  ;;  %v76_v26 = vld [vmem:[%s1021_s0 + $0x30] sm:$0xff] }
   0x9   :  { %467 = vmatpush.msra.mxu2 %v50_v3  ;;  %468 = vmatpush.msra.mxu3 %v50_v3  ;;  %v78_v18 = vld [vmem:[%s1021_s0 + $0x40] sm:$0xff]  ;;  %v83_v23 = vld [vmem:[%s1021_s0 + $0x68] sm:$0xff]  ;;  %v84_v27 = vld [vmem:[%s1021_s0 + $0x70] sm:$0xff] }
   0xa   :  { %90 = vmatpush.msra.mxu0 %v49_v4  ;;  %469 = vmatpush.msra.mxu1 %v49_v4  ;;  %v82_v19 = vld [vmem:[%s1021_s0 + $0x60] sm:$0xff]  ;;  %v73_v28 = vld [vmem:[%s1021_s0 + $0x18] sm:$0xff] }
   0xb   :  { %470 = vmatpush.msra.mxu2 %v49_v4  ;;  %471 = vmatpush.msra.mxu3 %v49_v4  ;;  %v81_v29 = vld [vmem:[%s1021_s0 + $0x58] sm:$0xff]  ;;  %v697_v34 = vld [vmem:[%s1022_s2] ss:$0 sm:$0xff] }
   0xc   :  { %91 = vmatpush.msra.mxu0 %v48_v5  ;;  %472 = vmatpush.msra.mxu1 %v48_v5  ;;  %v77_v30 = vld [vmem:[%s1021_s0 + $0x38] sm:$0xff] }
   0xd   :  { %473 = vmatpush.msra.mxu2 %v48_v5  ;;  %474 = vmatpush.msra.mxu3 %v48_v5  ;;  %v85_v31 = vld [vmem:[%s1021_s0 + $0x78] sm:$0xff] }
   0xe   :  { %92 = vmatpush.msra.mxu0 %v47_v6  ;;  %475 = vmatpush.msra.mxu1 %v47_v6 }
   0xf   :  { %476 = vmatpush.msra.mxu2 %v47_v6  ;;  %477 = vmatpush.msra.mxu3 %v47_v6 }
  0x10   :  { %93 = vmatpush.msra.mxu0 %v46_v7  ;;  %478 = vmatpush.msra.mxu1 %v46_v7 }
  0x11   :  { %479 = vmatpush.msra.mxu2 %v46_v7  ;;  %480 = vmatpush.msra.mxu3 %v46_v7 }
  0x12   :  { %94 = vmatpush.msra.mxu0 %v45_v8  ;;  %481 = vmatpush.msra.mxu1 %v45_v8 }
  0x13   :  { %482 = vmatpush.msra.mxu2 %v45_v8  ;;  %483 = vmatpush.msra.mxu3 %v45_v8 }
  0x14   :  { %95 = vmatpush.msra.mxu0 %v44_v9  ;;  %484 = vmatpush.msra.mxu1 %v44_v9 }
  0x15   :  { %485 = vmatpush.msra.mxu2 %v44_v9  ;;  %486 = vmatpush.msra.mxu3 %v44_v9 }
  0x16   :  { %96 = vmatpush.msra.mxu0 %v43_v10  ;;  %487 = vmatpush.msra.mxu1 %v43_v10 }
  0x17   :  { %488 = vmatpush.msra.mxu2 %v43_v10  ;;  %489 = vmatpush.msra.mxu3 %v43_v10 }
  0x18   :  { %97 = vmatpush.msra.mxu0 %v42_v11  ;;  %490 = vmatpush.msra.mxu1 %v42_v11 }
  0x19   :  { %491 = vmatpush.msra.mxu2 %v42_v11  ;;  %492 = vmatpush.msra.mxu3 %v42_v11 }
  0x1a   :  { %98 = vmatpush.msra.mxu0 %v41_v12  ;;  %493 = vmatpush.msra.mxu1 %v41_v12 }
  0x1b   :  { %494 = vmatpush.msra.mxu2 %v41_v12  ;;  %495 = vmatpush.msra.mxu3 %v41_v12 }
  0x1c   :  { %99 = vmatpush.msra.mxu0 %v40_v13  ;;  %496 = vmatpush.msra.mxu1 %v40_v13 }
  0x1d   :  { %497 = vmatpush.msra.mxu2 %v40_v13  ;;  %498 = vmatpush.msra.mxu3 %v40_v13 }
  0x1e   :  { %100 = vmatpush.msra.mxu0 %v39_v14  ;;  %499 = vmatpush.msra.mxu1 %v39_v14 }
  0x1f   :  { %500 = vmatpush.msra.mxu2 %v39_v14  ;;  %501 = vmatpush.msra.mxu3 %v39_v14 }
  0x20   :  { %101 = vmatpush.msra.mxu0 %v38_v15  ;;  %502 = vmatpush.msra.mxu1 %v38_v15 }
  0x21   :  { %503 = vmatpush.msra.mxu2 %v38_v15  ;;  %102 = vmatmul.f32.vlgmr.msra.gmra.mxu0 %v70_v16 }
  0x22   :  { %114 = vmatmul.f32.vlgmr.msra.gmra.mxu1 %v74_v17  ;;  %126 = vmatmul.f32.vlgmr.msra.gmra.mxu2 %v78_v18 }
  0x23   :  { %504 = vmatpush.msra.mxu3 %v38_v15 }
  0x24   :  { %138 = vmatmul.f32.vlgmr.msra.gmra.mxu3 %v82_v19 }
  0x29   :  { %105 = vmatmul.f32.gmra.mxu0 %v71_v20 }
  0x2a   :  { %129 = vmatmul.f32.gmra.mxu2 %v79_v21  ;;  %117 = vmatmul.f32.gmra.mxu1 %v75_v22 }
  0x2c   :  { %141 = vmatmul.f32.gmra.mxu3 %v83_v23 }
  0x31   :  { %108 = vmatmul.f32.gmra.mxu0 %v72_v24 }
  0x32   :  { %132 = vmatmul.f32.gmra.mxu2 %v80_v25  ;;  %120 = vmatmul.f32.gmra.mxu1 %v76_v26 }
  0x34   :  { %144 = vmatmul.f32.gmra.mxu3 %v84_v27 }
  0x39   :  { %111 = vmatmul.f32.gmra.mxu0 %v73_v28 }
  0x3a   :  { %135 = vmatmul.f32.gmra.mxu2 %v81_v29  ;;  %123 = vmatmul.f32.gmra.mxu1 %v77_v30 }
  0x3c   :  { %147 = vmatmul.f32.gmra.mxu3 %v85_v31 }
  0x9e   :  { %v103_v35 = vpop.f32.mrf.mxu0 }
  0x9f   :  { %v115_v36 = vpop.f32.mrf.mxu1  ;;  %v701_v37 = vadd.f32 %v697_v34, %v103_v35 }
  0xa0   :  { %v704_v38 = vadd.f32 %v697_v34, %v115_v36 }
  0xa1   :  { %v241_v39 = vsel %vm240_vm0, %v701_v37, -inf  ;;  %222 = vst [vmem:[%s1023_s3] sm:$0xff] %v701_v37 }
  0xa2   :  { %v245_v40 = vsel %vm240_vm0, %v704_v38, -inf  ;;  %226 = vst [vmem:[%s1023_s3 + $0x20] sm:$0xff] %v704_v38  ;;  %257 = vmax.xlane.f32.xlu0 %v241_v39 }
  0xa3   :  { %265 = vmax.xlane.f32.xlu2 %v245_v40 }
  0xa5   :  { %v127_v41 = vpop.f32.mrf.mxu2 }
  0xa6   :  { %v106_v42 = vpop.f32.mrf.mxu0  ;;  %v721_v45 = vadd.f32 %v697_v34, %v127_v41 }
  0xa7   :  { %v139_v43 = vpop.f32.mrf.mxu3  ;;  %v118_v44 = vpop.f32.mrf.mxu1  ;;  %v724_v46 = vadd.f32 %v697_v34, %v106_v42 }
  0xa8   :  { %230 = vst [vmem:[%s1023_s3 + $0x40] sm:$0xff] %v721_v45  ;;  %v249_v47 = vsel %vm240_vm0, %v721_v45, -inf  ;;  %v734_v48 = vadd.f32 %v697_v34, %v139_v43  ;;  %v737_v49 = vadd.f32 %v697_v34, %v118_v44 }
  0xa9   :  { %223 = vst [vmem:[%s1023_s3 + $0x8] sm:$0xff] %v724_v46  ;;  %v242_v61 = vsel %vm240_vm0, %v724_v46, -inf }
  0xaa   :  { %234 = vst [vmem:[%s1023_s3 + $0x60] sm:$0xff] %v734_v48  ;;  %v253_v50 = vsel %vm240_vm0, %v734_v48, -inf  ;;  %v246_v57 = vsel %vm240_vm0, %v737_v49, -inf }
  0xab   :  { %273 = vmax.xlane.f32.xlu2 %v249_v47  ;;  %281 = vmax.xlane.f32.xlu0 %v253_v50  ;;  %227 = vst [vmem:[%s1023_s3 + $0x28] sm:$0xff] %v737_v49 }
  0xad   :  { %v130_v51 = vpop.f32.mrf.mxu2 }
  0xae   :  { %v109_v52 = vpop.f32.mrf.mxu0  ;;  %v755_v55 = vadd.f32 %v697_v34, %v130_v51 }
  0xaf   :  { %v142_v53 = vpop.f32.mrf.mxu3  ;;  %v121_v54 = vpop.f32.mrf.mxu1  ;;  %v758_v56 = vadd.f32 %v697_v34, %v109_v52 }
  0xb0   :  { %231 = vst [vmem:[%s1023_s3 + $0x48] sm:$0xff] %v755_v55  ;;  %v768_v58 = vadd.f32 %v697_v34, %v121_v54  ;;  %v771_v59 = vadd.f32 %v697_v34, %v142_v53  ;;  %v250_v7 = vsel %vm240_vm0, %v755_v55, -inf }
  0xb1   :  { %v243_v60 = vsel %vm240_vm0, %v758_v56, -inf  ;;  %224 = vst [vmem:[%s1023_s3 + $0x10] sm:$0xff] %v758_v56 }
  0xb2   :  { %261 = vmax.xlane.f32.xlu1 %v243_v60  ;;  %228 = vst [vmem:[%s1023_s3 + $0x30] sm:$0xff] %v768_v58  ;;  %v247_v13 = vsel %vm240_vm0, %v768_v58, -inf  ;;  %v254_v18 = vsel %vm240_vm0, %v771_v59, -inf }
  0xb3   :  { %267 = vmax.xlane.f32.xlu2 %v246_v57  ;;  %259 = vmax.xlane.f32.xlu0 %v242_v61  ;;  %235 = vst [vmem:[%s1023_s3 + $0x68] sm:$0xff] %v771_v59 }
  0xb5   :  { %v133_v62 = vpop.f32.mrf.mxu2 }
  0xb6   :  { %v112_v63 = vpop.f32.mrf.mxu0  ;;  %v792_v2 = vadd.f32 %v697_v34, %v133_v62 }
  0xb7   :  { %v145_v0 = vpop.f32.mrf.mxu3  ;;  %v124_v1 = vpop.f32.mrf.mxu1  ;;  %v795_v3 = vadd.f32 %v697_v34, %v112_v63 }
  0xb8   :  { %232 = vst [vmem:[%s1023_s3 + $0x50] sm:$0xff] %v792_v2  ;;  %v251_v4 = vsel %vm240_vm0, %v792_v2, -inf  ;;  %v805_v5 = vadd.f32 %v697_v34, %v145_v0  ;;  %v808_v6 = vadd.f32 %v697_v34, %v124_v1 }
  0xb9   :  { %225 = vst [vmem:[%s1023_s3 + $0x18] sm:$0xff] %v795_v3  ;;  %v244_v11 = vsel %vm240_vm0, %v795_v3, -inf }
  0xba   :  { %277 = vmax.xlane.f32.xlu1 %v251_v4  ;;  %236 = vst [vmem:[%s1023_s3 + $0x70] sm:$0xff] %v805_v5  ;;  %v255_v15 = vsel %vm240_vm0, %v805_v5, -inf  ;;  %v248_v16 = vsel %vm240_vm0, %v808_v6, -inf }
  0xbb   :  { %275 = vmax.xlane.f32.xlu0 %v250_v7  ;;  %229 = vst [vmem:[%s1023_s3 + $0x38] sm:$0xff] %v808_v6 }
  0xbd   :  { %v136_v8 = vpop.f32.mrf.mxu2 }
  0xbe   :  { %v826_v10 = vadd.f32 %v697_v34, %v136_v8 }
  0xbf   :  { %v148_v9 = vpop.f32.mrf.mxu3 }
  0xc0   :  { %233 = vst [vmem:[%s1023_s3 + $0x58] sm:$0xff] %v826_v10  ;;  %v252_v12 = vsel %vm240_vm0, %v826_v10, -inf  ;;  %v842_v14 = vadd.f32 %v697_v34, %v148_v9 }
  0xc1   :  { %279 = vmax.xlane.f32.xlu2 %v252_v12 }
  0xc2   :  { %263 = vmax.xlane.f32.xlu1 %v244_v11  ;;  %237 = vst [vmem:[%s1023_s3 + $0x78] sm:$0xff] %v842_v14  ;;  %v256_v17 = vsel %vm240_vm0, %v842_v14, -inf }
  0xc3   :  { %269 = vmax.xlane.f32.xlu0 %v247_v13 }
  0xc9   :  { %285 = vmax.xlane.f32.xlu2 %v255_v15 }
  0xca   :  { %271 = vmax.xlane.f32.xlu1 %v248_v16 }
  0xcb   :  { %287 = vmax.xlane.f32.xlu0 %v256_v17 }
  0xd2   :  { %283 = vmax.xlane.f32.xlu1 %v254_v18 }
 0x115   :  { %v258_v19 = vpop.xlane.xlu0 %257 }
 0x116   :  { %v266_v20 = vpop.xlane.xlu2 %265  ;;  %v861_v21 = vsub.f32 %v701_v37, %v258_v19 }
 0x117   :  { %v864_v22 = vsub.f32 %v704_v38, %v266_v20 }
 0x118   :  { %v305_v23 = vmul.f32 1.442695, %v861_v21 }
 0x119   :  { %v313_v24 = vmul.f32 1.442695, %v864_v22 }
 0x11a   :  { %507 = vpow2.f32 %v305_v23 }
 0x11b   :  { %509 = vpow2.f32 %v313_v24 }
 0x11e   :  { %v274_v25 = vpop.xlane.xlu2 %273  ;;  %v282_v26 = vpop.xlane.xlu0 %281 }
 0x11f   :  { %v869_v27 = vsub.f32 %v721_v45, %v274_v25  ;;  %v872_v28 = vsub.f32 %v734_v48, %v282_v26 }
 0x120   :  { %v508_v29 = vpop.eup %507 }
 0x121   :  { %v510_v30 = vpop.eup %509  ;;  %v321_v31 = vmul.f32 1.442695, %v869_v27  ;;  %v329_v32 = vmul.f32 1.442695, %v872_v28  ;;  %v337_v34 = vsel %vm240_vm0, %v508_v29, 0.0 }
 0x122   :  { %v341_v35 = vsel %vm240_vm0, %v510_v30, 0.0  ;;  %353 = vadd.xlane.f32.xlu1 %v337_v34 }
 0x123   :  { %511 = vpow2.f32 %v321_v31  ;;  %361 = vadd.xlane.f32.xlu2 %v341_v35 }
 0x124   :  { %513 = vpow2.f32 %v329_v32 }
 0x125   :  { %v262_v36 = vpop.xlane.xlu1 %261 }
 0x126   :  { %v268_v37 = vpop.xlane.xlu2 %267  ;;  %v260_v38 = vpop.xlane.xlu0 %259  ;;  %v889_v44 = vsub.f32 %v758_v56, %v262_v36 }
 0x127   :  { %v881_v39 = vsub.f32 %v737_v49, %v268_v37  ;;  %v884_v40 = vsub.f32 %v724_v46, %v260_v38 }
 0x128   :  { %v309_v46 = vmul.f32 1.442695, %v889_v44 }
 0x129   :  { %v512_v41 = vpop.eup %511  ;;  %v315_v42 = vmul.f32 1.442695, %v881_v39  ;;  %v307_v43 = vmul.f32 1.442695, %v884_v40 }
 0x12a   :  { %v514_v45 = vpop.eup %513  ;;  %v345_v47 = vsel %vm240_vm0, %v512_v41, 0.0 }
 0x12b   :  { %515 = vpow2.f32 %v315_v42  ;;  %369 = vadd.xlane.f32.xlu0 %v345_v47  ;;  %v349_v48 = vsel %vm240_vm0, %v514_v45, 0.0 }
 0x12c   :  { %517 = vpow2.f32 %v307_v43  ;;  %377 = vadd.xlane.f32.xlu1 %v349_v48 }
 0x12d   :  { %v278_v49 = vpop.xlane.xlu1 %277  ;;  %519 = vpow2.f32 %v309_v46 }
 0x12e   :  { %v276_v50 = vpop.xlane.xlu0 %275  ;;  %v897_v51 = vsub.f32 %v792_v2, %v278_v49 }
 0x12f   :  { %v900_v52 = vsub.f32 %v755_v55, %v276_v50 }
 0x130   :  { %v325_v53 = vmul.f32 1.442695, %v897_v51 }
 0x131   :  { %v516_v54 = vpop.eup %515  ;;  %v323_v56 = vmul.f32 1.442695, %v900_v52 }
 0x132   :  { %v518_v57 = vpop.eup %517  ;;  %521 = vpow2.f32 %v325_v53  ;;  %v342_v60 = vsel %vm240_vm0, %v516_v54, 0.0 }
 0x133   :  { %523 = vpow2.f32 %v323_v56  ;;  %363 = vadd.xlane.f32.xlu0 %v342_v60  ;;  %v338_v61 = vsel %vm240_vm0, %v518_v57, 0.0  ;;  %v520_v1 = vpop.eup %519 }
 0x134   :  { %355 = vadd.xlane.f32.xlu2 %v338_v61  ;;  %v280_v62 = vpop.xlane.xlu2 %279  ;;  %v339_v12 = vsel %vm240_vm0, %v520_v1, 0.0 }
 0x135   :  { %v909_v55 = vsub.f32 %v826_v10, %v280_v62  ;;  %v264_v63 = vpop.xlane.xlu1 %263 }
 0x136   :  { %v270_v0 = vpop.xlane.xlu0 %269  ;;  %v916_v8 = vsub.f32 %v795_v3, %v264_v63 }
 0x137   :  { %v327_v2 = vmul.f32 1.442695, %v909_v55  ;;  %v913_v4 = vsub.f32 %v768_v58, %v270_v0 }
 0x138   :  { %v522_v7 = vpop.eup %521  ;;  %v311_v58 = vmul.f32 1.442695, %v916_v8 }
 0x139   :  { %v524_v9 = vpop.eup %523  ;;  %525 = vpow2.f32 %v327_v2  ;;  %v317_v11 = vmul.f32 1.442695, %v913_v4  ;;  %v347_v10 = vsel %vm240_vm0, %v522_v7, 0.0 }
 0x13a   :  { %v346_v13 = vsel %vm240_vm0, %v524_v9, 0.0 }
 0x13b   :  { %527 = vpow2.f32 %v317_v11  ;;  %357 = vadd.xlane.f32.xlu0 %v339_v12  ;;  %371 = vadd.xlane.f32.xlu1 %v346_v13 }
 0x13c   :  { %373 = vadd.xlane.f32.xlu2 %v347_v10  ;;  %v286_v3 = vpop.xlane.xlu2 %285  ;;  %529 = vpow2.f32 %v311_v58 }
 0x13d   :  { %v927_v15 = vsub.f32 %v805_v5, %v286_v3  ;;  %v272_v16 = vpop.xlane.xlu1 %271 }
 0x13e   :  { %v288_v17 = vpop.xlane.xlu0 %287  ;;  %v930_v18 = vsub.f32 %v808_v6, %v272_v16 }
 0x13f   :  { %v526_v19 = vpop.eup %525  ;;  %v333_v20 = vmul.f32 1.442695, %v927_v15  ;;  %v935_v25 = vsub.f32 %v842_v14, %v288_v17 }
 0x140   :  { %v319_v23 = vmul.f32 1.442695, %v930_v18  ;;  %v348_v5 = vsel %vm240_vm0, %v526_v19, 0.0 }
 0x141   :  { %v528_v24 = vpop.eup %527  ;;  %531 = vpow2.f32 %v333_v20  ;;  %v335_v6 = vmul.f32 1.442695, %v935_v25 }
 0x142   :  { %533 = vpow2.f32 %v319_v23  ;;  %v343_v26 = vsel %vm240_vm0, %v528_v24, 0.0  ;;  %v530_v30 = vpop.eup %529 }
 0x143   :  { %375 = vadd.xlane.f32.xlu0 %v348_v5  ;;  %365 = vadd.xlane.f32.xlu1 %v343_v26  ;;  %535 = vpow2.f32 %v335_v6  ;;  %v340_v37 = vsel %vm240_vm0, %v530_v30, 0.0 }
 0x145   :  { %v284_v29 = vpop.xlane.xlu1 %283 }
 0x146   :  { %v943_v31 = vsub.f32 %v771_v59, %v284_v29 }
 0x147   :  { %v532_v32 = vpop.eup %531 }
 0x148   :  { %v534_v34 = vpop.eup %533  ;;  %v331_v14 = vmul.f32 1.442695, %v943_v31  ;;  %v351_v36 = vsel %vm240_vm0, %v532_v32, 0.0 }
 0x149   :  { %v344_v35 = vsel %vm240_vm0, %v534_v34, 0.0  ;;  %v536_v59 = vpop.eup %535 }
 0x14a   :  { %537 = vpow2.f32 %v331_v14  ;;  %367 = vadd.xlane.f32.xlu2 %v344_v35  ;;  %v352_v42 = vsel %vm240_vm0, %v536_v59, 0.0 }
 0x14b   :  { %381 = vadd.xlane.f32.xlu0 %v351_v36  ;;  %359 = vadd.xlane.f32.xlu1 %v340_v37 }
 0x150   :  { %v538_v38 = vpop.eup %537 }
 0x151   :  { %v350_v41 = vsel %vm240_vm0, %v538_v38, 0.0 }
 0x152   :  { %379 = vadd.xlane.f32.xlu2 %v350_v41 }
 0x153   :  { %383 = vadd.xlane.f32.xlu1 %v352_v42 }
 0x195   :  { %v354_v43 = vpop.xlane.xlu1 %353 }
 0x196   :  { %v362_v45 = vpop.xlane.xlu2 %361  ;;  %539 = vlog2.f32 %v354_v43 }
 0x197   :  { %541 = vlog2.f32 %v362_v45 }
 0x19c   :  { %v540_v47 = vpop.eup %539 }
 0x19d   :  { %v542_v48 = vpop.eup %541  ;;  %v386_v46 = vmul.f32 0.6931472, %v540_v47 }
 0x19e   :  { %v394_v49 = vmul.f32 0.6931472, %v542_v48  ;;  %v370_v50 = vpop.xlane.xlu0 %369 }
 0x19f   :  { %v417_v53 = vsub.f32 %v861_v21, %v386_v46  ;;  %543 = vlog2.f32 %v370_v50  ;;  %v378_v54 = vpop.xlane.xlu1 %377 }
 0x1a0   :  { %v421_v56 = vsub.f32 %v864_v22, %v394_v49  ;;  %545 = vlog2.f32 %v378_v54 }
 0x1a1   :  { %433 = vst [vmem:[%s1024_s4] sm:$0xff] %v417_v53 }
 0x1a2   :  { %437 = vst [vmem:[%s1024_s4 + $0x20] sm:$0xff] %v421_v56 }
 0x1a5   :  { %v544_v33 = vpop.eup %543 }
 0x1a6   :  { %v546_v57 = vpop.eup %545  ;;  %v402_v60 = vmul.f32 0.6931472, %v544_v33  ;;  %v364_v61 = vpop.xlane.xlu0 %363 }
 0x1a7   :  { %v410_v62 = vmul.f32 0.6931472, %v546_v57  ;;  %v356_v63 = vpop.xlane.xlu2 %355  ;;  %547 = vlog2.f32 %v364_v61 }
 0x1a8   :  { %v425_v21 = vsub.f32 %v869_v27, %v402_v60  ;;  %549 = vlog2.f32 %v356_v63 }
 0x1a9   :  { %v429_v22 = vsub.f32 %v872_v28, %v410_v62 }
 0x1aa   :  { %441 = vst [vmem:[%s1024_s4 + $0x40] sm:$0xff] %v425_v21 }
 0x1ab   :  { %445 = vst [vmem:[%s1024_s4 + $0x60] sm:$0xff] %v429_v22 }
 0x1ad   :  { %v548_v0 = vpop.eup %547 }
 0x1ae   :  { %v550_v1 = vpop.eup %549  ;;  %v396_v2 = vmul.f32 0.6931472, %v548_v0  ;;  %v358_v7 = vpop.xlane.xlu0 %357 }
 0x1af   :  { %v372_v9 = vpop.xlane.xlu1 %371  ;;  %v388_v11 = vmul.f32 0.6931472, %v550_v1  ;;  %551 = vlog2.f32 %v358_v7  ;;  %v374_v10 = vpop.xlane.xlu2 %373 }
 0x1b0   :  { %v422_v27 = vsub.f32 %v881_v39, %v396_v2  ;;  %553 = vlog2.f32 %v374_v10 }
 0x1b1   :  { %v418_v28 = vsub.f32 %v884_v40, %v388_v11  ;;  %555 = vlog2.f32 %v372_v9 }
 0x1b2   :  { %438 = vst [vmem:[%s1024_s4 + $0x28] sm:$0xff] %v422_v27 }
 0x1b3   :  { %434 = vst [vmem:[%s1024_s4 + $0x8] sm:$0xff] %v418_v28 }
 0x1b5   :  { %v552_v12 = vpop.eup %551 }
 0x1b6   :  { %v554_v13 = vpop.eup %553  ;;  %v390_v58 = vmul.f32 0.6931472, %v552_v12  ;;  %v376_v3 = vpop.xlane.xlu0 %375 }
 0x1b7   :  { %v366_v16 = vpop.xlane.xlu1 %365  ;;  %v556_v17 = vpop.eup %555  ;;  %v406_v19 = vmul.f32 0.6931472, %v554_v13  ;;  %557 = vlog2.f32 %v376_v3 }
 0x1b8   :  { %v419_v39 = vsub.f32 %v889_v44, %v390_v58  ;;  %v404_v40 = vmul.f32 0.6931472, %v556_v17  ;;  %559 = vlog2.f32 %v366_v16 }
 0x1b9   :  { %v427_v20 = vsub.f32 %v897_v51, %v406_v19 }
 0x1ba   :  { %435 = vst [vmem:[%s1024_s4 + $0x10] sm:$0xff] %v419_v39  ;;  %v426_v23 = vsub.f32 %v900_v52, %v404_v40 }
 0x1bb   :  { %443 = vst [vmem:[%s1024_s4 + $0x50] sm:$0xff] %v427_v20 }
 0x1bc   :  { %442 = vst [vmem:[%s1024_s4 + $0x48] sm:$0xff] %v426_v23 }
 0x1bd   :  { %v558_v24 = vpop.eup %557  ;;  %v368_v44 = vpop.xlane.xlu2 %367 }
 0x1be   :  { %v560_v5 = vpop.eup %559  ;;  %v408_v26 = vmul.f32 0.6931472, %v558_v24  ;;  %v382_v6 = vpop.xlane.xlu0 %381  ;;  %561 = vlog2.f32 %v368_v44 }
 0x1bf   :  { %v360_v51 = vpop.xlane.xlu1 %359  ;;  %v398_v29 = vmul.f32 0.6931472, %v560_v5  ;;  %563 = vlog2.f32 %v382_v6 }
 0x1c0   :  { %v428_v30 = vsub.f32 %v909_v55, %v408_v26  ;;  %565 = vlog2.f32 %v360_v51 }
 0x1c1   :  { %v423_v52 = vsub.f32 %v913_v4, %v398_v29 }
 0x1c2   :  { %444 = vst [vmem:[%s1024_s4 + $0x58] sm:$0xff] %v428_v30 }
 0x1c3   :  { %439 = vst [vmem:[%s1024_s4 + $0x30] sm:$0xff] %v423_v52 }
 0x1c4   :  { %v562_v32 = vpop.eup %561 }
 0x1c5   :  { %v564_v34 = vpop.eup %563  ;;  %v400_v14 = vmul.f32 0.6931472, %v562_v32  ;;  %v380_v35 = vpop.xlane.xlu2 %379 }
 0x1c6   :  { %v566_v36 = vpop.eup %565  ;;  %v414_v37 = vmul.f32 0.6931472, %v564_v34  ;;  %567 = vlog2.f32 %v380_v35 }
 0x1c7   :  { %v384_v59 = vpop.xlane.xlu1 %383  ;;  %v424_v55 = vsub.f32 %v930_v18, %v400_v14  ;;  %v392_v38 = vmul.f32 0.6931472, %v566_v36 }
 0x1c8   :  { %569 = vlog2.f32 %v384_v59  ;;  %v431_v4 = vsub.f32 %v927_v15, %v414_v37 }
 0x1c9   :  { %440 = vst [vmem:[%s1024_s4 + $0x38] sm:$0xff] %v424_v55  ;;  %v420_v41 = vsub.f32 %v916_v8, %v392_v38 }
 0x1ca   :  { %447 = vst [vmem:[%s1024_s4 + $0x70] sm:$0xff] %v431_v4 }
 0x1cb   :  { %436 = vst [vmem:[%s1024_s4 + $0x18] sm:$0xff] %v420_v41 }
 0x1cc   :  { %v568_v42 = vpop.eup %567 }
 0x1cd   :  { %v412_v43 = vmul.f32 0.6931472, %v568_v42 }
 0x1ce   :  { %v570_v18 = vpop.eup %569 }
 0x1cf   :  { %v416_v45 = vmul.f32 0.6931472, %v570_v18  ;;  %v430_v15 = vsub.f32 %v943_v31, %v412_v43 }
 0x1d1   :  { %v432_v47 = vsub.f32 %v935_v25, %v416_v45  ;;  %446 = vst [vmem:[%s1024_s4 + $0x68] sm:$0xff] %v430_v15 }
 0x1d3   :  { %448 = vst [vmem:[%s1024_s4 + $0x78] sm:$0xff] %v432_v47 }

// kernel: rawls_gcn_grad_forward.4
= control target key start
LH: loop header
LB: loop body
LE: loop exit
PB: predicated region body
PF: predicated region fallthrough
CT: control target
= control target key end

     0   :  { %s761_s1 = inlined_call_operand.vmem [shape: f32[128,128], index: 1, kind: input, shape index: {}]   ;;  %s762_s0 = inlined_call_operand.vmem [shape: f32[128,128], index: 0, kind: input, shape index: {}]   ;;  %s763_s2 = inlined_call_operand.vmem [shape: f32[1,128], index: 2, kind: input, shape index: {}]   ;;  %s764_s3 = inlined_call_operand.vmem [shape: f32[128,128], index: 3, kind: input, shape index: {}]   ;;  %s765_s4 = inlined_call_operand.vmem [shape: f32[128,128], index: 4, kind: output, shape index: {0}]   ;;  %s766_s5 = inlined_call_operand.vmem [shape: f32[128,128], index: 5, kind: output, shape index: {1}]   ;;  %s767_s6 = inlined_call_operand.vmem [shape: f32[128,128], index: 6, kind: output, shape index: {2}]  }
   0x1   :  { %v57_v0 = vld [vmem:[%s761_s1 + $0x78] sm:$0xff]  ;;  %v56_v1 = vld [vmem:[%s761_s1 + $0x70] sm:$0xff]  ;;  %v55_v2 = vld [vmem:[%s761_s1 + $0x68] sm:$0xff] }
   0x2   :  { %383 = vmatpush.msra.mxu2 %v57_v0  ;;  %90 = vmatpush.msra.mxu0 %v57_v0  ;;  %v54_v3 = vld [vmem:[%s761_s1 + $0x60] sm:$0xff]  ;;  %v53_v4 = vld [vmem:[%s761_s1 + $0x58] sm:$0xff]  ;;  %v52_v5 = vld [vmem:[%s761_s1 + $0x50] sm:$0xff] }
   0x3   :  { %v51_v6 = vld [vmem:[%s761_s1 + $0x48] sm:$0xff]  ;;  %v50_v7 = vld [vmem:[%s761_s1 + $0x40] sm:$0xff]  ;;  %v49_v8 = vld [vmem:[%s761_s1 + $0x38] sm:$0xff] }
   0x4   :  { %384 = vmatpush.msra.mxu2 %v56_v1  ;;  %91 = vmatpush.msra.mxu0 %v56_v1  ;;  %v48_v9 = vld [vmem:[%s761_s1 + $0x30] sm:$0xff]  ;;  %v47_v10 = vld [vmem:[%s761_s1 + $0x28] sm:$0xff]  ;;  %v46_v11 = vld [vmem:[%s761_s1 + $0x20] sm:$0xff] }
   0x5   :  { %v45_v12 = vld [vmem:[%s761_s1 + $0x18] sm:$0xff]  ;;  %v44_v13 = vld [vmem:[%s761_s1 + $0x10] sm:$0xff]  ;;  %v43_v14 = vld [vmem:[%s761_s1 + $0x8] sm:$0xff] }
   0x6   :  { %385 = vmatpush.msra.mxu2 %v55_v2  ;;  %92 = vmatpush.msra.mxu0 %v55_v2  ;;  %v42_v15 = vld [vmem:[%s761_s1] sm:$0xff]  ;;  %v83_v18 = vld [vmem:[%s762_s0 + $0x48] sm:$0xff]  ;;  %v84_v20 = vld [vmem:[%s762_s0 + $0x50] sm:$0xff] }
   0x7   :  { %v82_v16 = vld [vmem:[%s762_s0 + $0x40] sm:$0xff]  ;;  %v75_v19 = vld [vmem:[%s762_s0 + $0x8] sm:$0xff]  ;;  %v76_v21 = vld [vmem:[%s762_s0 + $0x10] sm:$0xff] }
   0x8   :  { %386 = vmatpush.msra.mxu2 %v54_v3  ;;  %93 = vmatpush.msra.mxu0 %v54_v3  ;;  %v74_v17 = vld [vmem:[%s762_s0] sm:$0xff]  ;;  %v85_v22 = vld [vmem:[%s762_s0 + $0x58] sm:$0xff]  ;;  %v288_v25 = vld [vmem:[%s764_s3 + $0x70] sm:$0xff] }
   0x9   :  { %v77_v23 = vld [vmem:[%s762_s0 + $0x18] sm:$0xff]  ;;  %v287_v26 = vld [vmem:[%s764_s3 + $0x68] sm:$0xff]  ;;  %v286_v27 = vld [vmem:[%s764_s3 + $0x60] sm:$0xff] }
   0xa   :  { %387 = vmatpush.msra.mxu2 %v53_v4  ;;  %94 = vmatpush.msra.mxu0 %v53_v4  ;;  %v289_v24 = vld [vmem:[%s764_s3 + $0x78] sm:$0xff]  ;;  %v86_v28 = vld [vmem:[%s762_s0 + $0x60] sm:$0xff]  ;;  %v284_v31 = vld [vmem:[%s764_s3 + $0x50] sm:$0xff] }
   0xb   :  { %399 = vmatpush.msra.mxu3 %v289_v24  ;;  %290 = vmatpush.msra.mxu1 %v289_v24  ;;  %v78_v29 = vld [vmem:[%s762_s0 + $0x20] sm:$0xff]  ;;  %v285_v30 = vld [vmem:[%s764_s3 + $0x58] sm:$0xff]  ;;  %v283_v32 = vld [vmem:[%s764_s3 + $0x48] sm:$0xff] }
   0xc   :  { %388 = vmatpush.msra.mxu2 %v52_v5  ;;  %95 = vmatpush.msra.mxu0 %v52_v5  ;;  %v282_v33 = vld [vmem:[%s764_s3 + $0x40] sm:$0xff]  ;;  %v87_v34 = vld [vmem:[%s762_s0 + $0x68] sm:$0xff]  ;;  %v88_v36 = vld [vmem:[%s762_s0 + $0x70] sm:$0xff] }
   0xd   :  { %400 = vmatpush.msra.mxu3 %v288_v25  ;;  %291 = vmatpush.msra.mxu1 %v288_v25  ;;  %v79_v35 = vld [vmem:[%s762_s0 + $0x28] sm:$0xff]  ;;  %v80_v37 = vld [vmem:[%s762_s0 + $0x30] sm:$0xff]  ;;  %v89_v38 = vld [vmem:[%s762_s0 + $0x78] sm:$0xff] }
   0xe   :  { %389 = vmatpush.msra.mxu2 %v51_v6  ;;  %96 = vmatpush.msra.mxu0 %v51_v6  ;;  %v81_v39 = vld [vmem:[%s762_s0 + $0x38] sm:$0xff]  ;;  %v280_v41 = vld [vmem:[%s764_s3 + $0x30] sm:$0xff]  ;;  %v279_v42 = vld [vmem:[%s764_s3 + $0x28] sm:$0xff] }
   0xf   :  { %401 = vmatpush.msra.mxu3 %v287_v26  ;;  %292 = vmatpush.msra.mxu1 %v287_v26  ;;  %v281_v40 = vld [vmem:[%s764_s3 + $0x38] sm:$0xff]  ;;  %v278_v43 = vld [vmem:[%s764_s3 + $0x20] sm:$0xff]  ;;  %v276_v45 = vld [vmem:[%s764_s3 + $0x10] sm:$0xff] }
  0x10   :  { %390 = vmatpush.msra.mxu2 %v50_v7  ;;  %97 = vmatpush.msra.mxu0 %v50_v7  ;;  %v277_v44 = vld [vmem:[%s764_s3 + $0x18] sm:$0xff]  ;;  %v275_v46 = vld [vmem:[%s764_s3 + $0x8] sm:$0xff]  ;;  %v274_v47 = vld [vmem:[%s764_s3] sm:$0xff] }
  0x11   :  { %402 = vmatpush.msra.mxu3 %v286_v27  ;;  %293 = vmatpush.msra.mxu1 %v286_v27  ;;  %v599_v49 = vld [vmem:[%s763_s2] ss:$0 sm:$0xff] }
  0x12   :  { %391 = vmatpush.msra.mxu2 %v49_v8  ;;  %98 = vmatpush.msra.mxu0 %v49_v8 }
  0x13   :  { %403 = vmatpush.msra.mxu3 %v285_v30  ;;  %294 = vmatpush.msra.mxu1 %v285_v30 }
  0x14   :  { %392 = vmatpush.msra.mxu2 %v48_v9  ;;  %99 = vmatpush.msra.mxu0 %v48_v9 }
  0x15   :  { %404 = vmatpush.msra.mxu3 %v284_v31  ;;  %295 = vmatpush.msra.mxu1 %v284_v31 }
  0x16   :  { %393 = vmatpush.msra.mxu2 %v47_v10  ;;  %100 = vmatpush.msra.mxu0 %v47_v10 }
  0x17   :  { %405 = vmatpush.msra.mxu3 %v283_v32  ;;  %296 = vmatpush.msra.mxu1 %v283_v32 }
  0x18   :  { %394 = vmatpush.msra.mxu2 %v46_v11  ;;  %101 = vmatpush.msra.mxu0 %v46_v11 }
  0x19   :  { %406 = vmatpush.msra.mxu3 %v282_v33  ;;  %297 = vmatpush.msra.mxu1 %v282_v33 }
  0x1a   :  { %395 = vmatpush.msra.mxu2 %v45_v12  ;;  %102 = vmatpush.msra.mxu0 %v45_v12 }
  0x1b   :  { %407 = vmatpush.msra.mxu3 %v281_v40  ;;  %298 = vmatpush.msra.mxu1 %v281_v40 }
  0x1c   :  { %396 = vmatpush.msra.mxu2 %v44_v13  ;;  %103 = vmatpush.msra.mxu0 %v44_v13 }
  0x1d   :  { %408 = vmatpush.msra.mxu3 %v280_v41  ;;  %299 = vmatpush.msra.mxu1 %v280_v41 }
  0x1e   :  { %397 = vmatpush.msra.mxu2 %v43_v14  ;;  %104 = vmatpush.msra.mxu0 %v43_v14 }
  0x1f   :  { %409 = vmatpush.msra.mxu3 %v279_v42  ;;  %300 = vmatpush.msra.mxu1 %v279_v42 }
  0x20   :  { %398 = vmatpush.msra.mxu2 %v42_v15  ;;  %105 = vmatpush.msra.mxu0 %v42_v15 }
  0x21   :  { %130 = vmatmul.f32.vlgmr.msra.gmra.mxu2 %v82_v16  ;;  %106 = vmatmul.f32.vlgmr.msra.gmra.mxu0 %v74_v17 }
  0x22   :  { %410 = vmatpush.msra.mxu3 %v278_v43  ;;  %301 = vmatpush.msra.mxu1 %v278_v43 }
  0x24   :  { %411 = vmatpush.msra.mxu3 %v277_v44  ;;  %302 = vmatpush.msra.mxu1 %v277_v44 }
  0x26   :  { %412 = vmatpush.msra.mxu3 %v276_v45  ;;  %303 = vmatpush.msra.mxu1 %v276_v45 }
  0x28   :  { %413 = vmatpush.msra.mxu3 %v275_v46  ;;  %304 = vmatpush.msra.mxu1 %v275_v46 }
  0x29   :  { %133 = vmatmul.f32.gmra.mxu2 %v83_v18  ;;  %109 = vmatmul.f32.gmra.mxu0 %v75_v19 }
  0x2a   :  { %414 = vmatpush.msra.mxu3 %v274_v47  ;;  %305 = vmatpush.msra.mxu1 %v274_v47 }
  0x31   :  { %136 = vmatmul.f32.gmra.mxu2 %v84_v20  ;;  %112 = vmatmul.f32.gmra.mxu0 %v76_v21 }
  0x39   :  { %139 = vmatmul.f32.gmra.mxu2 %v85_v22  ;;  %115 = vmatmul.f32.gmra.mxu0 %v77_v23 }
  0x41   :  { %142 = vmatmul.f32.gmra.mxu2 %v86_v28  ;;  %118 = vmatmul.f32.gmra.mxu0 %v78_v29 }
  0x49   :  { %145 = vmatmul.f32.gmra.mxu2 %v87_v34  ;;  %121 = vmatmul.f32.gmra.mxu0 %v79_v35 }
  0x51   :  { %148 = vmatmul.f32.gmra.mxu2 %v88_v36  ;;  %124 = vmatmul.f32.gmra.mxu0 %v80_v37 }
  0x59   :  { %151 = vmatmul.f32.gmra.mxu2 %v89_v38  ;;  %127 = vmatmul.f32.gmra.mxu0 %v81_v39 }
  0x9e   :  { %v107_v48 = vpop.f32.mrf.mxu0 }
  0x9f   :  { %v210_v50 = vadd.f32 %v599_v49, %v107_v48 }
  0xa1   :  { %226 = vst [vmem:[%s765_s4] sm:$0xff] %v210_v50  ;;  %v242_v51 = vmax.f32 %v210_v50, 0.0 }
  0xa3   :  { %258 = vst [vmem:[%s766_s5] sm:$0xff] %v242_v51  ;;  %306 = vmatmul.f32.vlgmr.msra.gmra.mxu1 %v242_v51 }
  0xa4   :  { %v131_v52 = vpop.f32.mrf.mxu2 }
  0xa5   :  { %v218_v54 = vadd.f32 %v599_v49, %v131_v52 }
  0xa6   :  { %v110_v53 = vpop.f32.mrf.mxu0 }
  0xa7   :  { %234 = vst [vmem:[%s765_s4 + $0x40] sm:$0xff] %v218_v54  ;;  %v250_v55 = vmax.f32 %v218_v54, 0.0  ;;  %v211_v56 = vadd.f32 %v599_v49, %v110_v53 }
  0xa9   :  { %266 = vst [vmem:[%s766_s5 + $0x40] sm:$0xff] %v250_v55  ;;  %330 = vmatmul.f32.vlgmr.msra.gmra.mxu3 %v250_v55  ;;  %v243_v57 = vmax.f32 %v211_v56, 0.0 }
  0xaa   :  { %227 = vst [vmem:[%s765_s4 + $0x8] sm:$0xff] %v211_v56 }
  0xab   :  { %259 = vst [vmem:[%s766_s5 + $0x8] sm:$0xff] %v243_v57  ;;  %309 = vmatmul.f32.gmra.mxu1 %v243_v57 }
  0xac   :  { %v134_v58 = vpop.f32.mrf.mxu2 }
  0xad   :  { %v219_v60 = vadd.f32 %v599_v49, %v134_v58 }
  0xae   :  { %v113_v59 = vpop.f32.mrf.mxu0 }
  0xaf   :  { %235 = vst [vmem:[%s765_s4 + $0x48] sm:$0xff] %v219_v60  ;;  %v251_v61 = vmax.f32 %v219_v60, 0.0  ;;  %v212_v62 = vadd.f32 %v599_v49, %v113_v59 }
  0xb1   :  { %267 = vst [vmem:[%s766_s5 + $0x48] sm:$0xff] %v251_v61  ;;  %333 = vmatmul.f32.gmra.mxu3 %v251_v61  ;;  %v244_v63 = vmax.f32 %v212_v62, 0.0 }
  0xb2   :  { %228 = vst [vmem:[%s765_s4 + $0x10] sm:$0xff] %v212_v62 }
  0xb3   :  { %260 = vst [vmem:[%s766_s5 + $0x10] sm:$0xff] %v244_v63  ;;  %312 = vmatmul.f32.gmra.mxu1 %v244_v63 }
  0xb4   :  { %v137_v0 = vpop.f32.mrf.mxu2 }
  0xb5   :  { %v220_v2 = vadd.f32 %v599_v49, %v137_v0 }
  0xb6   :  { %v116_v1 = vpop.f32.mrf.mxu0 }
  0xb7   :  { %236 = vst [vmem:[%s765_s4 + $0x50] sm:$0xff] %v220_v2  ;;  %v252_v3 = vmax.f32 %v220_v2, 0.0  ;;  %v213_v4 = vadd.f32 %v599_v49, %v116_v1 }
  0xb9   :  { %268 = vst [vmem:[%s766_s5 + $0x50] sm:$0xff] %v252_v3  ;;  %336 = vmatmul.f32.gmra.mxu3 %v252_v3  ;;  %v245_v5 = vmax.f32 %v213_v4, 0.0 }
  0xba   :  { %229 = vst [vmem:[%s765_s4 + $0x18] sm:$0xff] %v213_v4 }
  0xbb   :  { %261 = vst [vmem:[%s766_s5 + $0x18] sm:$0xff] %v245_v5  ;;  %315 = vmatmul.f32.gmra.mxu1 %v245_v5 }
  0xbc   :  { %v140_v6 = vpop.f32.mrf.mxu2 }
  0xbd   :  { %v221_v8 = vadd.f32 %v599_v49, %v140_v6 }
  0xbe   :  { %v119_v7 = vpop.f32.mrf.mxu0 }
  0xbf   :  { %237 = vst [vmem:[%s765_s4 + $0x58] sm:$0xff] %v221_v8  ;;  %v253_v9 = vmax.f32 %v221_v8, 0.0  ;;  %v214_v10 = vadd.f32 %v599_v49, %v119_v7 }
  0xc1   :  { %269 = vst [vmem:[%s766_s5 + $0x58] sm:$0xff] %v253_v9  ;;  %339 = vmatmul.f32.gmra.mxu3 %v253_v9  ;;  %v246_v11 = vmax.f32 %v214_v10, 0.0 }
  0xc2   :  { %230 = vst [vmem:[%s765_s4 + $0x20] sm:$0xff] %v214_v10 }
  0xc3   :  { %262 = vst [vmem:[%s766_s5 + $0x20] sm:$0xff] %v246_v11  ;;  %318 = vmatmul.f32.gmra.mxu1 %v246_v11 }
  0xc4   :  { %v143_v12 = vpop.f32.mrf.mxu2 }
  0xc5   :  { %v222_v14 = vadd.f32 %v599_v49, %v143_v12 }
  0xc6   :  { %v122_v13 = vpop.f32.mrf.mxu0 }
  0xc7   :  { %238 = vst [vmem:[%s765_s4 + $0x60] sm:$0xff] %v222_v14  ;;  %v254_v15 = vmax.f32 %v222_v14, 0.0  ;;  %v215_v16 = vadd.f32 %v599_v49, %v122_v13 }
  0xc9   :  { %270 = vst [vmem:[%s766_s5 + $0x60] sm:$0xff] %v254_v15  ;;  %342 = vmatmul.f32.gmra.mxu3 %v254_v15  ;;  %v247_v17 = vmax.f32 %v215_v16, 0.0 }
  0xca   :  { %231 = vst [vmem:[%s765_s4 + $0x28] sm:$0xff] %v215_v16 }
  0xcb   :  { %263 = vst [vmem:[%s766_s5 + $0x28] sm:$0xff] %v247_v17  ;;  %321 = vmatmul.f32.gmra.mxu1 %v247_v17 }
  0xcc   :  { %v146_v18 = vpop.f32.mrf.mxu2 }
  0xcd   :  { %v223_v20 = vadd.f32 %v599_v49, %v146_v18 }
  0xce   :  { %v125_v19 = vpop.f32.mrf.mxu0 }
  0xcf   :  { %239 = vst [vmem:[%s765_s4 + $0x68] sm:$0xff] %v223_v20  ;;  %v255_v21 = vmax.f32 %v223_v20, 0.0  ;;  %v216_v22 = vadd.f32 %v599_v49, %v125_v19 }
  0xd1   :  { %271 = vst [vmem:[%s766_s5 + $0x68] sm:$0xff] %v255_v21  ;;  %345 = vmatmul.f32.gmra.mxu3 %v255_v21  ;;  %v248_v23 = vmax.f32 %v216_v22, 0.0 }
  0xd2   :  { %232 = vst [vmem:[%s765_s4 + $0x30] sm:$0xff] %v216_v22 }
  0xd3   :  { %264 = vst [vmem:[%s766_s5 + $0x30] sm:$0xff] %v248_v23  ;;  %324 = vmatmul.f32.gmra.mxu1 %v248_v23 }
  0xd4   :  { %v149_v24 = vpop.f32.mrf.mxu2 }
  0xd5   :  { %v224_v26 = vadd.f32 %v599_v49, %v149_v24 }
  0xd6   :  { %v128_v25 = vpop.f32.mrf.mxu0 }
  0xd7   :  { %240 = vst [vmem:[%s765_s4 + $0x70] sm:$0xff] %v224_v26  ;;  %v256_v27 = vmax.f32 %v224_v26, 0.0  ;;  %v217_v28 = vadd.f32 %v599_v49, %v128_v25 }
  0xd9   :  { %272 = vst [vmem:[%s766_s5 + $0x70] sm:$0xff] %v256_v27  ;;  %348 = vmatmul.f32.gmra.mxu3 %v256_v27  ;;  %v249_v29 = vmax.f32 %v217_v28, 0.0 }
  0xda   :  { %233 = vst [vmem:[%s765_s4 + $0x38] sm:$0xff] %v217_v28 }
  0xdb   :  { %265 = vst [vmem:[%s766_s5 + $0x38] sm:$0xff] %v249_v29  ;;  %327 = vmatmul.f32.gmra.mxu1 %v249_v29 }
  0xdc   :  { %v152_v30 = vpop.f32.mrf.mxu2 }
  0xdd   :  { %v225_v31 = vadd.f32 %v599_v49, %v152_v30 }
  0xdf   :  { %241 = vst [vmem:[%s765_s4 + $0x78] sm:$0xff] %v225_v31  ;;  %v257_v32 = vmax.f32 %v225_v31, 0.0 }
  0xe1   :  { %273 = vst [vmem:[%s766_s5 + $0x78] sm:$0xff] %v257_v32  ;;  %351 = vmatmul.f32.gmra.mxu3 %v257_v32 }
 0x120   :  { %v307_v33 = vpop.f32.mrf.mxu1 }
 0x121   :  { %355 = vst [vmem:[%s767_s6] sm:$0xff] %v307_v33 }
 0x128   :  { %v310_v34 = vpop.f32.mrf.mxu1 }
 0x129   :  { %356 = vst [vmem:[%s767_s6 + $0x8] sm:$0xff] %v310_v34 }
 0x12c   :  { %v331_v35 = vpop.f32.mrf.mxu3 }
 0x12d   :  { %363 = vst [vmem:[%s767_s6 + $0x40] sm:$0xff] %v331_v35 }
 0x130   :  { %v313_v36 = vpop.f32.mrf.mxu1 }
 0x131   :  { %357 = vst [vmem:[%s767_s6 + $0x10] sm:$0xff] %v313_v36 }
 0x134   :  { %v334_v37 = vpop.f32.mrf.mxu3 }
 0x135   :  { %364 = vst [vmem:[%s767_s6 + $0x48] sm:$0xff] %v334_v37 }
 0x138   :  { %v316_v38 = vpop.f32.mrf.mxu1 }
 0x139   :  { %358 = vst [vmem:[%s767_s6 + $0x18] sm:$0xff] %v316_v38 }
 0x13c   :  { %v337_v39 = vpop.f32.mrf.mxu3 }
 0x13d   :  { %365 = vst [vmem:[%s767_s6 + $0x50] sm:$0xff] %v337_v39 }
 0x140   :  { %v319_v40 = vpop.f32.mrf.mxu1 }
 0x141   :  { %359 = vst [vmem:[%s767_s6 + $0x20] sm:$0xff] %v319_v40 }
 0x144   :  { %v340_v41 = vpop.f32.mrf.mxu3 }
 0x145   :  { %366 = vst [vmem:[%s767_s6 + $0x58] sm:$0xff] %v340_v41 }
 0x148   :  { %v322_v42 = vpop.f32.mrf.mxu1 }
 0x149   :  { %360 = vst [vmem:[%s767_s6 + $0x28] sm:$0xff] %v322_v42 }
 0x14c   :  { %v343_v43 = vpop.f32.mrf.mxu3 }
 0x14d   :  { %367 = vst [vmem:[%s767_s6 + $0x60] sm:$0xff] %v343_v43 }
 0x150   :  { %v325_v44 = vpop.f32.mrf.mxu1 }
 0x151   :  { %361 = vst [vmem:[%s767_s6 + $0x30] sm:$0xff] %v325_v44 }
 0x154   :  { %v346_v45 = vpop.f32.mrf.mxu3 }
 0x155   :  { %368 = vst [vmem:[%s767_s6 + $0x68] sm:$0xff] %v346_v45 }
 0x158   :  { %v328_v46 = vpop.f32.mrf.mxu1 }
 0x159   :  { %362 = vst [vmem:[%s767_s6 + $0x38] sm:$0xff] %v328_v46 }
 0x15c   :  { %v349_v47 = vpop.f32.mrf.mxu3 }
 0x15d   :  { %369 = vst [vmem:[%s767_s6 + $0x70] sm:$0xff] %v349_v47 }
 0x164   :  { %v352_v48 = vpop.f32.mrf.mxu3 }
 0x165   :  { %370 = vst [vmem:[%s767_s6 + $0x78] sm:$0xff] %v352_v48 }

</bundles_post_ra>
